<compile_context>
chip_gen: v5e
topology: v5e:2x2
jax: 0.10.0
libtpu: 0.0.40
codegen_flags: <defaults>
</compile_context>

<pallas_src>
import functools

import jax
import jax.numpy as jnp
from jax.experimental import pallas as pl
from jax.experimental.pallas import tpu as pltpu


def _round_up(x, m):
    return (x + m - 1) // m * m


def _swish(z):
    return z * jax.nn.sigmoid(z)


def _layernorm(z, gamma, beta, n_real, n_pad, eps):
    # Padded columns of z are exactly 0 (zero-padded weights/bias/gamma/beta),
    # so:  mean over the padded width / n_real is exact, and
    #      sum((z-mean)^2) over the padded width over-counts by
    #      (n_pad-n_real)*mean^2  -> subtract it.  This is the exact two-pass
    # variance (no E[z^2]-mean^2 catastrophic cancellation).
    inv_n = 1.0 / n_real
    mean = jnp.sum(z, axis=-1, keepdims=True) * inv_n
    c = z - mean
    var = (jnp.sum(c * c, axis=-1, keepdims=True)
           - float(n_pad - n_real) * mean * mean) * inv_n
    # Padded columns: c = -mean but gamma = beta = 0 -> output stays exactly 0.
    return c * jax.lax.rsqrt(var + eps) * gamma + beta


def _encoder_kernel(x_ref, w1_ref, wh_ref, whead_ref, p_ref, bhead_ref,
                    out_ref, acc_ref, ss_ref, *, input_real, hidden_real, eps):
    k = pl.program_id(1)
    n_k = pl.num_programs(1)
    tb, tk = x_ref.shape
    h_pad = acc_ref.shape[-1]

    @pl.when(k == 0)
    def _init():
        acc_ref[...] = jnp.zeros_like(acc_ref)
        ss_ref[...] = jnp.zeros_like(ss_ref)

    def _accumulate(xv):
        # fc1 partial product on the MXU (bf16 inputs, f32 accumulation).
        acc_ref[...] += jnp.dot(xv.astype(jnp.bfloat16), w1_ref[...],
                                preferred_element_type=jnp.float32)
        # Row sum-of-squares: fold lanes into a 128-wide partial with pure VPU
        # adds; the single cross-lane (XLU) reduction happens at finalisation.
        xf = xv.astype(jnp.float32)
        sq = xf * xf
        part = sq[:, 0:128]
        for j in range(1, tk // 128):
            part = part + sq[:, j * 128:(j + 1) * 128]
        ss_ref[...] += part

    if input_real % tk == 0:
        _accumulate(x_ref[...])
    else:
        # Last K tile is ragged: its out-of-bounds lanes hold unspecified
        # data, so zero them before the dot / square-sum.  Full tiles skip
        # the select entirely (this branch is only emitted when ragged).
        @pl.when(k != n_k - 1)
        def _full_tile():
            _accumulate(x_ref[...])

        @pl.when(k == n_k - 1)
        def _ragged_tile():
            xb = x_ref[...]
            col = jax.lax.broadcasted_iota(jnp.int32, xb.shape, 1)
            valid = input_real - k * tk
            _accumulate(jnp.where(col < valid, xb, jnp.zeros_like(xb)))

    @pl.when(k == n_k - 1)
    def _finish():
        p = p_ref[...]          # (15, H_pad): rows 0-4 bias, 5-9 gamma, 10-14 beta
        bhead = bhead_ref[...]  # (1, 2*L_pad)

        def tail(rows):
            # x / ||x|| applied after the K loop (commutes with the matmul).
            # Tiny floor keeps all-zero rows finite (the reference NaNs there).
            ss = jnp.sum(ss_ref[rows, :], axis=-1, keepdims=True)
            inv_norm = jax.lax.rsqrt(jnp.maximum(ss, 1e-30))
            # TODO(synk): F.dropout is modeled in eval mode (identity);
            # training-mode masking would need pltpu.prng_* and is omitted.
            z = acc_ref[rows, :] * inv_norm + p[0:1, :]
            h = _layernorm(_swish(z), p[5:6, :], p[10:11, :],
                           hidden_real, h_pad, eps)
            s = h                              # running residual h1 + ... + hi
            for i in range(4):                 # fc2 .. fc5
                z = jnp.dot(h.astype(jnp.bfloat16), wh_ref[i],
                            preferred_element_type=jnp.float32)
                z = z + p[i + 1:i + 2, :] + s
                h = _layernorm(_swish(z), p[6 + i:7 + i, :],
                               p[11 + i:12 + i, :], hidden_real, h_pad, eps)
                s = s + h
            # Fused mu|logvar head: one MXU launch, lane-dense store.
            return jnp.dot(h.astype(jnp.bfloat16), whead_ref[...],
                           preferred_element_type=jnp.float32) + bhead

        # Two independent half-tiles: gives the VLIW scheduler independent
        # matmul vs swish/LayerNorm chains to interleave in the serial tail.
        half = tb // 2
        out_ref[pl.ds(0, half), :] = tail(pl.ds(0, half)).astype(out_ref.dtype)
        out_ref[pl.ds(half, half), :] = tail(pl.ds(half, half)).astype(out_ref.dtype)


def pack_encoder_params(params, ln_params, *, block_k=2048):
    """Pad / cast / pack the Encoder weights ONCE (hoisted out of the forward
    path; repack only when the weights or block_k change).

    params: 7 tuples (W_t, b) with W_t of shape (in_dim, out_dim) for
    fc1..fc5, fc_mu, fc_logvar.  ln_params: 5 tuples (gamma, beta)."""
    K, H = params[0][0].shape
    L = params[5][0].shape[1]
    H_pad = _round_up(H, 128)
    L_pad = _round_up(L, 128)
    TK = min(_round_up(block_k, 128), _round_up(K, 128))
    K_pad = _round_up(K, TK)          # W1 padded so every K grid block is in-bounds
    bf16, f32 = jnp.bfloat16, jnp.float32

    w1 = jnp.zeros((K_pad, H_pad), bf16).at[:K, :H].set(params[0][0].astype(bf16))

    wh = jnp.zeros((4, H_pad, H_pad), bf16)
    for i in range(4):
        wh = wh.at[i, :H, :H].set(params[i + 1][0].astype(bf16))

    whead = jnp.zeros((H_pad, 2 * L_pad), bf16)
    whead = whead.at[:H, :L].set(params[5][0].astype(bf16))
    whead = whead.at[:H, L_pad:L_pad + L].set(params[6][0].astype(bf16))

    bhead = jnp.zeros((1, 2 * L_pad), f32)
    bhead = bhead.at[0, :L].set(params[5][1].reshape(-1).astype(f32))
    bhead = bhead.at[0, L_pad:L_pad + L].set(params[6][1].reshape(-1).astype(f32))

    # rows 0-4: biases fc1..fc5 ; 5-9: LN gammas ; 10-14: LN betas
    p_small = jnp.zeros((15, H_pad), f32)
    for i in range(5):
        p_small = p_small.at[i, :H].set(params[i][1].reshape(-1).astype(f32))
        p_small = p_small.at[5 + i, :H].set(ln_params[i][0].reshape(-1).astype(f32))
        p_small = p_small.at[10 + i, :H].set(ln_params[i][1].reshape(-1).astype(f32))

    meta = dict(input_dim=K, hidden_dim=H, latent_dim=L,
                hidden_pad=H_pad, latent_pad=L_pad, block_k=TK)
    return dict(w1=w1, wh=wh, whead=whead, p_small=p_small, bhead=bhead,
                meta=meta)


def encoder_forward(x, packed, dropout_rate=0.0, eps=0.1, block_b=512,
                    vmem_budget_bytes=56 * 1024 * 1024):
    """x: (batch, input_dim), any float dtype (pass bf16 to avoid a cast copy).
    packed: result of pack_encoder_params.  Returns (mu, logvar) in f32.

    vmem_budget_bytes: keep <= ~56 MiB for v7x (64 MiB physical VMEM);
    v5e/v6e (128 MiB) callers may raise it toward ~112 MiB for bigger tiles."""
    del dropout_rate  # eval-mode: identity (see TODO in kernel)

    meta = packed["meta"]
    K, H, L = meta["input_dim"], meta["hidden_dim"], meta["latent_dim"]
    H_pad, L_pad, TK = meta["hidden_pad"], meta["latent_pad"], meta["block_k"]

    B = x.shape[0]
    assert x.shape[1] == K, "input_dim mismatch with packed params"

    # Stream x as bf16 (halves HBM bytes on the dominant operand); no padded
    # copy is materialised -- ragged edge tiles are handled in-kernel.
    if x.dtype != jnp.bfloat16:
        x = x.astype(jnp.bfloat16)

    TB = _round_up(min(block_b, _round_up(B, 16)), 16)
    # v7x megacore: prefer >=2 batch tiles so both TensorCores get work.
    if pl.cdiv(B, TB) < 2 and TB >= 512:
        TB //= 2

    def vmem_bytes(tb, tk):
        dbl = 2  # pipeline double-buffering (conservative for invariant blocks)
        return (dbl * (tb * tk * 2                    # x block (bf16)
                       + tk * H_pad * 2               # W1 block (bf16)
                       + 4 * H_pad * H_pad * 2        # W2..W5 (grid-invariant)
                       + H_pad * 2 * L_pad * 2        # Wmu|Wlv
                       + 16 * H_pad * 4               # bias/LN pack (sublane-padded)
                       + 8 * 2 * L_pad * 4            # bmu|blv
                       + tb * 2 * L_pad * 4)          # out block
                + tb * H_pad * 4 + tb * 128 * 4)      # acc + ss scratch

    while vmem_bytes(TB, TK) > vmem_budget_bytes and TB > 16:
        TB = max(16, _round_up(TB // 2, 16))

    grid = (pl.cdiv(B, TB), pl.cdiv(K, TK))
    B_out = grid[0] * TB
    f32 = jnp.float32

    kernel = functools.partial(_encoder_kernel, input_real=K, hidden_real=H,
                               eps=eps)

    out = pl.pallas_call(
        kernel,
        out_shape=jax.ShapeDtypeStruct((B_out, 2 * L_pad), f32),
        grid_spec=pltpu.PrefetchScalarGridSpec(
            num_scalar_prefetch=0,
            grid=grid,
            in_specs=[
                pl.BlockSpec((TB, TK), lambda b, k: (b, k)),              # x
                pl.BlockSpec((TK, H_pad), lambda b, k: (k, 0)),           # W1
                pl.BlockSpec((4, H_pad, H_pad), lambda b, k: (0, 0, 0)),  # W2..W5
                pl.BlockSpec((H_pad, 2 * L_pad), lambda b, k: (0, 0)),    # Wmu|Wlv
                pl.BlockSpec((15, H_pad), lambda b, k: (0, 0)),           # bias/LN
                pl.BlockSpec((1, 2 * L_pad), lambda b, k: (0, 0)),        # bmu|blv
            ],
            out_specs=pl.BlockSpec((TB, 2 * L_pad), lambda b, k: (b, 0)),
            scratch_shapes=[
                pltpu.VMEM((TB, H_pad), f32),   # fc1 K-accumulator
                pltpu.VMEM((TB, 128), f32),     # sum(x^2) lane-wide partials
            ],
        ),
        compiler_params=pltpu.CompilerParams(
            dimension_semantics=("parallel", "arbitrary"),
            vmem_limit_bytes=int(vmem_budget_bytes),
        ),
    )(x, packed["w1"], packed["wh"], packed["whead"], packed["p_small"],
      packed["bhead"])

    mu = out[:B, :L]
    logvar = out[:B, L_pad:L_pad + L]
    return mu, logvar


def init_encoder_params(key, hidden_dim, latent_dim, input_dim):
    """Matches the module's _initialize_weights: kaiming_uniform_ weights
    (bound sqrt(6/fan_in)), zero biases; LayerNorm gamma=1, beta=0.
    Weights are returned transposed: (in_dim, out_dim)."""
    dims = [
        (input_dim, hidden_dim),   # fc1
        (hidden_dim, hidden_dim),  # fc2
        (hidden_dim, hidden_dim),  # fc3
        (hidden_dim, hidden_dim),  # fc4
        (hidden_dim, hidden_dim),  # fc5
        (hidden_dim, latent_dim),  # fc_mu
        (hidden_dim, latent_dim),  # fc_logvar
    ]
    params = []
    keys = jax.random.split(key, len(dims))
    for k, (fan_in, fan_out) in zip(keys, dims):
        bound = (6.0 / fan_in) ** 0.5
        w = jax.random.uniform(k, (fan_in, fan_out), jnp.float32, -bound, bound)
        b = jnp.zeros((fan_out,), jnp.float32)
        params.append((w, b))
    ln = [(jnp.ones((hidden_dim,), jnp.float32),
           jnp.zeros((hidden_dim,), jnp.float32)) for _ in range(5)]
    return params, ln


def _encoder_reference(x, params, ln_params, eps):
    """Pure-JAX f32 reference mirroring the PyTorch module (eval mode)."""
    x = x.astype(jnp.float32)
    x = x / jnp.sqrt(jnp.sum(x * x, axis=-1, keepdims=True))

    def ln(z, g, b):
        m = jnp.mean(z, axis=-1, keepdims=True)
        v = jnp.mean(jnp.square(z - m), axis=-1, keepdims=True)
        return (z - m) / jnp.sqrt(v + eps) * g.reshape(1, -1) + b.reshape(1, -1)

    h_prev, s = x, 0.0
    for i in range(5):
        w, b = params[i]
        z = h_prev @ w + b.reshape(1, -1)
        if i > 0:
            z = z + s
        h = ln(z * jax.nn.sigmoid(z), ln_params[i][0], ln_params[i][1])
        s = s + h
        h_prev = h
    mu = h_prev @ params[5][0] + params[5][1].reshape(1, -1)
    logvar = h_prev @ params[6][0] + params[6][1].reshape(1, -1)
    return mu, logvar


if __name__ == "__main__":
    # Small shapes consistent with the module: x is (batch, input_dim).
    # input_dim=300 with block_k=128 gives 3 K steps with a ragged last tile,
    # exercising both the K-accumulation and the in-kernel edge masking.
    batch, input_dim, hidden_dim, latent_dim = 8, 300, 32, 16
    eps = 0.1

    key = jax.random.PRNGKey(0)
    k_x, k_p = jax.random.split(key)
    x = jax.random.uniform(k_x, (batch, input_dim), jnp.float32, 0.1, 1.0)

    params, ln_params = init_encoder_params(k_p, hidden_dim, latent_dim, input_dim)

    # Pack once (hoisted out of the forward path), then run the forward.
    packed = pack_encoder_params(params, ln_params, block_k=128)
    mu, logvar = encoder_forward(x, packed, dropout_rate=0.5, eps=eps,
                                 block_b=512)
    jax.block_until_ready((mu, logvar))

    mu_ref, lv_ref = _encoder_reference(x, params, ln_params, eps)

    assert mu.shape == (batch, latent_dim) and logvar.shape == (batch, latent_dim)
    assert bool(jnp.all(jnp.isfinite(mu))) and bool(jnp.all(jnp.isfinite(logvar)))
    # bf16 MXU inputs (and bf16-streamed x) -> loose tolerance vs f32 reference.
    assert bool(jnp.allclose(mu, mu_ref, atol=1e-1, rtol=1e-1)), "mu mismatch"
    assert bool(jnp.allclose(logvar, lv_ref, atol=1e-1, rtol=1e-1)), "logvar mismatch"
    print("KERNEL_OK")
</pallas_src>

<mosaic_0001>
module attributes {stable_mosaic.version = 11 : i64} {
  func.func @_encoder_kernel(%arg0: i32, %arg1: i32, %arg2: memref<16x128xbf16, #tpu.memory_space<vmem>>, %arg3: memref<128x128xbf16, #tpu.memory_space<vmem>>, %arg4: memref<4x128x128xbf16, #tpu.memory_space<vmem>>, %arg5: memref<128x256xbf16, #tpu.memory_space<vmem>>, %arg6: memref<15x128xf32, #tpu.memory_space<vmem>>, %arg7: memref<1x256xf32, #tpu.memory_space<vmem>>, %arg8: memref<16x256xf32, #tpu.memory_space<vmem>>, %arg9: memref<16x128xf32, #tpu.memory_space<vmem>>, %arg10: memref<16x128xf32, #tpu.memory_space<vmem>>) attributes {dimension_semantics = [#tpu.dimension_semantics<parallel>, #tpu.dimension_semantics<arbitrary>], iteration_bounds = array<i64: 1, 3>, scalar_prefetch = 0 : i64, scratch_operands = 2 : i64, tpu.core_type = #tpu.core_type<tc>, window_params = [{transform_indices = @transform_0, window_bounds = array<i64: 16, 128>}, {transform_indices = @transform_1, window_bounds = array<i64: 128, 128>}, {pipeline_mode = #tpu.pipeline_mode<synchronous>, transform_indices = @transform_2, window_bounds = array<i64: 4, 128, 128>}, {pipeline_mode = #tpu.pipeline_mode<synchronous>, transform_indices = @transform_3, window_bounds = array<i64: 128, 256>}, {pipeline_mode = #tpu.pipeline_mode<synchronous>, transform_indices = @transform_4, window_bounds = array<i64: 15, 128>}, {pipeline_mode = #tpu.pipeline_mode<synchronous>, transform_indices = @transform_5, window_bounds = array<i64: 1, 256>}, {transform_indices = @transform_6, window_bounds = array<i64: 16, 256>}]} {
    %c0_i32 = arith.constant 0 : i32
    %0 = arith.cmpi eq, %arg1, %c0_i32 : i32
    %1 = arith.extui %0 : i1 to i32
    %c0_i32_0 = arith.constant 0 : i32
    %2 = arith.cmpi ne, %1, %c0_i32_0 : i32
    scf.if %2 {
      %cst = arith.constant 0.000000e+00 : f32
      %12 = vector.broadcast %cst : f32 to vector<16x128xf32>
      %c0 = arith.constant 0 : index
      %c0_6 = arith.constant 0 : index
      %13 = vector.load %arg9[%c0, %c0_6] : memref<16x128xf32, #tpu.memory_space<vmem>>, vector<16x128xf32>
      tpu.vector_store %arg9[%c0, %c0_6], %12 {strides = array<i32>} : memref<16x128xf32, #tpu.memory_space<vmem>>, vector<16x128xf32>,
      %cst_7 = arith.constant 0.000000e+00 : f32
      %14 = vector.broadcast %cst_7 : f32 to vector<16x128xf32>
      %c0_8 = arith.constant 0 : index
      %c0_9 = arith.constant 0 : index
      %15 = vector.load %arg10[%c0_8, %c0_9] : memref<16x128xf32, #tpu.memory_space<vmem>>, vector<16x128xf32>
      tpu.vector_store %arg10[%c0_8, %c0_9], %14 {strides = array<i32>} : memref<16x128xf32, #tpu.memory_space<vmem>>, vector<16x128xf32>,
    } else {
    }
    %c2_i32 = arith.constant 2 : i32
    %3 = arith.cmpi ne, %arg1, %c2_i32 : i32
    %4 = arith.extui %3 : i1 to i32
    %c0_i32_1 = arith.constant 0 : i32
    %5 = arith.cmpi ne, %4, %c0_i32_1 : i32
    scf.if %5 {
      %c0 = arith.constant 0 : index
      %c0_6 = arith.constant 0 : index
      %12 = vector.load %arg2[%c0, %c0_6] : memref<16x128xbf16, #tpu.memory_space<vmem>>, vector<16x128xbf16>
      %c0_7 = arith.constant 0 : index
      %c0_8 = arith.constant 0 : index
      %13 = vector.load %arg9[%c0_7, %c0_8] : memref<16x128xf32, #tpu.memory_space<vmem>>, vector<16x128xf32>
      %c0_9 = arith.constant 0 : index
      %c0_10 = arith.constant 0 : index
      %14 = vector.load %arg3[%c0_9, %c0_10] : memref<128x128xbf16, #tpu.memory_space<vmem>>, vector<128x128xbf16>
      %cst = arith.constant dense<0.000000e+00> : vector<16x128xf32>
      %15 = tpu.matmul %12, %14, %cst {dimension_numbers = #tpu.dot_dimension_numbers<[1], [0], [0], [1], [0, 0, 1, 1], [], []>} : vector<16x128xbf16>, vector<128x128xbf16>, vector<16x128xf32> -> vector<16x128xf32>
      %16 = arith.addf %13, %15 : vector<16x128xf32>
      %c0_11 = arith.constant 0 : index
      %c0_12 = arith.constant 0 : index
      %17 = vector.load %arg9[%c0_11, %c0_12] : memref<16x128xf32, #tpu.memory_space<vmem>>, vector<16x128xf32>
      tpu.vector_store %arg9[%c0_11, %c0_12], %16 {strides = array<i32>} : memref<16x128xf32, #tpu.memory_space<vmem>>, vector<16x128xf32>,
      %18 = arith.extf %12 : vector<16x128xbf16> to vector<16x128xf32>
      %19 = arith.mulf %18, %18 : vector<16x128xf32>
      %c0_13 = arith.constant 0 : index
      %c0_14 = arith.constant 0 : index
      %20 = vector.load %arg10[%c0_13, %c0_14] : memref<16x128xf32, #tpu.memory_space<vmem>>, vector<16x128xf32>
      %21 = arith.addf %20, %19 : vector<16x128xf32>
      %c0_15 = arith.constant 0 : index
      %c0_16 = arith.constant 0 : index
      %22 = vector.load %arg10[%c0_15, %c0_16] : memref<16x128xf32, #tpu.memory_space<vmem>>, vector<16x128xf32>
      tpu.vector_store %arg10[%c0_15, %c0_16], %21 {strides = array<i32>} : memref<16x128xf32, #tpu.memory_space<vmem>>, vector<16x128xf32>,
    } else {
    }
    %c2_i32_2 = arith.constant 2 : i32
    %6 = arith.cmpi eq, %arg1, %c2_i32_2 : i32
    %7 = arith.extui %6 : i1 to i32
    %c0_i32_3 = arith.constant 0 : i32
    %8 = arith.cmpi ne, %7, %c0_i32_3 : i32
    scf.if %8 {
      %c0 = arith.constant 0 : index
      %c0_6 = arith.constant 0 : index
      %12 = vector.load %arg2[%c0, %c0_6] : memref<16x128xbf16, #tpu.memory_space<vmem>>, vector<16x128xbf16>
      %13 = tpu.iota {dimensions = array<i32: 1>} : vector<16x128xi32>
      %c128_i32 = arith.constant 128 : i32
      %14 = arith.muli %arg1, %c128_i32 : i32
      %c300_i32 = arith.constant 300 : i32
      %15 = arith.subi %c300_i32, %14 : i32
      %16 = vector.broadcast %15 : i32 to vector<16x128xi32>
      %17 = arith.cmpi slt, %13, %16 : vector<16x128xi32>
      %cst = arith.constant 0.000000e+00 : bf16
      %18 = vector.broadcast %cst : bf16 to vector<16x128xbf16>
      %19 = arith.select %17, %12, %18 : vector<16x128xi1>, vector<16x128xbf16>
      %c0_7 = arith.constant 0 : index
      %c0_8 = arith.constant 0 : index
      %20 = vector.load %arg9[%c0_7, %c0_8] : memref<16x128xf32, #tpu.memory_space<vmem>>, vector<16x128xf32>
      %c0_9 = arith.constant 0 : index
      %c0_10 = arith.constant 0 : index
      %21 = vector.load %arg3[%c0_9, %c0_10] : memref<128x128xbf16, #tpu.memory_space<vmem>>, vector<128x128xbf16>
      %cst_11 = arith.constant dense<0.000000e+00> : vector<16x128xf32>
      %22 = tpu.matmul %19, %21, %cst_11 {dimension_numbers = #tpu.dot_dimension_numbers<[1], [0], [0], [1], [0, 0, 1, 1], [], []>} : vector<16x128xbf16>, vector<128x128xbf16>, vector<16x128xf32> -> vector<16x128xf32>
      %23 = arith.addf %20, %22 : vector<16x128xf32>
      %c0_12 = arith.constant 0 : index
      %c0_13 = arith.constant 0 : index
      %24 = vector.load %arg9[%c0_12, %c0_13] : memref<16x128xf32, #tpu.memory_space<vmem>>, vector<16x128xf32>
      tpu.vector_store %arg9[%c0_12, %c0_13], %23 {strides = array<i32>} : memref<16x128xf32, #tpu.memory_space<vmem>>, vector<16x128xf32>,
      %25 = arith.extf %19 : vector<16x128xbf16> to vector<16x128xf32>
      %26 = arith.mulf %25, %25 : vector<16x128xf32>
      %c0_14 = arith.constant 0 : index
      %c0_15 = arith.constant 0 : index
      %27 = vector.load %arg10[%c0_14, %c0_15] : memref<16x128xf32, #tpu.memory_space<vmem>>, vector<16x128xf32>
      %28 = arith.addf %27, %26 : vector<16x128xf32>
      %c0_16 = arith.constant 0 : index
      %c0_17 = arith.constant 0 : index
      %29 = vector.load %arg10[%c0_16, %c0_17] : memref<16x128xf32, #tpu.memory_space<vmem>>, vector<16x128xf32>
      tpu.vector_store %arg10[%c0_16, %c0_17], %28 {strides = array<i32>} : memref<16x128xf32, #tpu.memory_space<vmem>>, vector<16x128xf32>,
    } else {
    }
    %c2_i32_4 = arith.constant 2 : i32
    %9 = arith.cmpi eq, %arg1, %c2_i32_4 : i32
    %10 = arith.extui %9 : i1 to i32
    %c0_i32_5 = arith.constant 0 : i32
    %11 = arith.cmpi ne, %10, %c0_i32_5 : i32
    scf.if %11 {
      %c0 = arith.constant 0 : index
      %c0_6 = arith.constant 0 : index
      %12 = vector.load %arg6[%c0, %c0_6] : memref<15x128xf32, #tpu.memory_space<vmem>>, vector<15x128xf32>
      %c0_7 = arith.constant 0 : index
      %c0_8 = arith.constant 0 : index
      %13 = vector.load %arg7[%c0_7, %c0_8] : memref<1x256xf32, #tpu.memory_space<vmem>>, vector<1x256xf32>
      %c0_9 = arith.constant 0 : index
      %c0_10 = arith.constant 0 : index
      %14 = vector.load %arg10[%c0_9, %c0_10] : memref<16x128xf32, #tpu.memory_space<vmem>>, vector<8x128xf32>
      %cst = arith.constant dense<0.000000e+00> : vector<8xf32>
      %15 = vector.multi_reduction <add>, %14, %cst [1] : vector<8x128xf32> to vector<8xf32>
      %16 = vector.shape_cast %15 : vector<8xf32> to vector<8x1xf32>
      %cst_11 = arith.constant 1.000000e-30 : f32
      %17 = vector.broadcast %cst_11 : f32 to vector<8x1xf32>
      %18 = arith.maximumf %16, %17 : vector<8x1xf32>
      %19 = math.rsqrt %18 : vector<8x1xf32>
      %c0_12 = arith.constant 0 : index
      %c0_13 = arith.constant 0 : index
      %20 = vector.load %arg9[%c0_12, %c0_13] : memref<16x128xf32, #tpu.memory_space<vmem>>, vector<8x128xf32>
      %21 = vector.broadcast %19 : vector<8x1xf32> to vector<8x128xf32>
      %22 = arith.mulf %20, %21 : vector<8x128xf32>
      %23 = vector.extract_strided_slice %12 {offsets = [0, 0], sizes = [1, 128], strides = [1, 1]} : vector<15x128xf32> to vector<1x128xf32>
      %24 = vector.broadcast %23 : vector<1x128xf32> to vector<8x128xf32>
      %25 = arith.addf %22, %24 : vector<8x128xf32>
      %26 = arith.negf %25 : vector<8x128xf32>
      %27 = math.exp %26 : vector<8x128xf32>
      %cst_14 = arith.constant 1.000000e+00 : f32
      %28 = vector.broadcast %cst_14 : f32 to vector<8x128xf32>
      %29 = arith.addf %28, %27 : vector<8x128xf32>
      %30 = arith.divf %28, %29 : vector<8x128xf32>
      %31 = arith.mulf %25, %30 : vector<8x128xf32>
      %32 = vector.extract_strided_slice %12 {offsets = [5, 0], sizes = [1, 128], strides = [1, 1]} : vector<15x128xf32> to vector<1x128xf32>
      %33 = vector.extract_strided_slice %12 {offsets = [10, 0], sizes = [1, 128], strides = [1, 1]} : vector<15x128xf32> to vector<1x128xf32>
      %cst_15 = arith.constant dense<0.000000e+00> : vector<8xf32>
      %34 = vector.multi_reduction <add>, %31, %cst_15 [1] : vector<8x128xf32> to vector<8xf32>
      %35 = vector.shape_cast %34 : vector<8xf32> to vector<8x1xf32>
      %cst_16 = arith.constant 3.125000e-02 : f32
      %36 = vector.broadcast %cst_16 : f32 to vector<8x1xf32>
      %37 = arith.mulf %35, %36 : vector<8x1xf32>
      %38 = vector.broadcast %37 : vector<8x1xf32> to vector<8x128xf32>
      %39 = arith.subf %31, %38 : vector<8x128xf32>
      %40 = arith.mulf %39, %39 : vector<8x128xf32>
      %cst_17 = arith.constant dense<0.000000e+00> : vector<8xf32>
      %41 = vector.multi_reduction <add>, %40, %cst_17 [1] : vector<8x128xf32> to vector<8xf32>
      %42 = vector.shape_cast %41 : vector<8xf32> to vector<8x1xf32>
      %cst_18 = arith.constant 9.600000e+01 : f32
      %43 = vector.broadcast %cst_18 : f32 to vector<8x1xf32>
      %44 = arith.mulf %43, %37 : vector<8x1xf32>
      %45 = arith.mulf %44, %37 : vector<8x1xf32>
      %46 = arith.subf %42, %45 : vector<8x1xf32>
      %cst_19 = arith.constant 3.125000e-02 : f32
      %47 = vector.broadcast %cst_19 : f32 to vector<8x1xf32>
      %48 = arith.mulf %46, %47 : vector<8x1xf32>
      %cst_20 = arith.constant 1.000000e-01 : f32
      %49 = vector.broadcast %cst_20 : f32 to vector<8x1xf32>
      %50 = arith.addf %48, %49 : vector<8x1xf32>
      %51 = math.rsqrt %50 : vector<8x1xf32>
      %52 = vector.broadcast %51 : vector<8x1xf32> to vector<8x128xf32>
      %53 = arith.mulf %39, %52 : vector<8x128xf32>
      %54 = vector.broadcast %32 : vector<1x128xf32> to vector<8x128xf32>
      %55 = arith.mulf %53, %54 : vector<8x128xf32>
      %56 = vector.broadcast %33 : vector<1x128xf32> to vector<8x128xf32>
      %57 = arith.addf %55, %56 : vector<8x128xf32>
      %58 = arith.truncf %57 : vector<8x128xf32> to vector<8x128xbf16>
      %c0_21 = arith.constant 0 : index
      %c0_22 = arith.constant 0 : index
      %c0_23 = arith.constant 0 : index
      %59 = vector.load %arg4[%c0_21, %c0_22, %c0_23] : memref<4x128x128xbf16, #tpu.memory_space<vmem>>, vector<1x128x128xbf16>
      %60 = vector.shape_cast %59 : vector<1x128x128xbf16> to vector<128x128xbf16>
      %cst_24 = arith.constant dense<0.000000e+00> : vector<8x128xf32>
      %61 = tpu.matmul %58, %60, %cst_24 {dimension_numbers = #tpu.dot_dimension_numbers<[1], [0], [0], [1], [0, 0, 1, 1], [], []>} : vector<8x128xbf16>, vector<128x128xbf16>, vector<8x128xf32> -> vector<8x128xf32>
      %62 = vector.extract_strided_slice %12 {offsets = [1, 0], sizes = [1, 128], strides = [1, 1]} : vector<15x128xf32> to vector<1x128xf32>
      %63 = vector.broadcast %62 : vector<1x128xf32> to vector<8x128xf32>
      %64 = arith.addf %61, %63 : vector<8x128xf32>
      %65 = arith.addf %64, %57 : vector<8x128xf32>
      %66 = arith.negf %65 : vector<8x128xf32>
      %67 = math.exp %66 : vector<8x128xf32>
      %cst_25 = arith.constant 1.000000e+00 : f32
      %68 = vector.broadcast %cst_25 : f32 to vector<8x128xf32>
      %69 = arith.addf %68, %67 : vector<8x128xf32>
      %70 = arith.divf %68, %69 : vector<8x128xf32>
      %71 = arith.mulf %65, %70 : vector<8x128xf32>
      %72 = vector.extract_strided_slice %12 {offsets = [6, 0], sizes = [1, 128], strides = [1, 1]} : vector<15x128xf32> to vector<1x128xf32>
      %73 = vector.extract_strided_slice %12 {offsets = [11, 0], sizes = [1, 128], strides = [1, 1]} : vector<15x128xf32> to vector<1x128xf32>
      %cst_26 = arith.constant dense<0.000000e+00> : vector<8xf32>
      %74 = vector.multi_reduction <add>, %71, %cst_26 [1] : vector<8x128xf32> to vector<8xf32>
      %75 = vector.shape_cast %74 : vector<8xf32> to vector<8x1xf32>
      %cst_27 = arith.constant 3.125000e-02 : f32
      %76 = vector.broadcast %cst_27 : f32 to vector<8x1xf32>
      %77 = arith.mulf %75, %76 : vector<8x1xf32>
      %78 = vector.broadcast %77 : vector<8x1xf32> to vector<8x128xf32>
      %79 = arith.subf %71, %78 : vector<8x128xf32>
      %80 = arith.mulf %79, %79 : vector<8x128xf32>
      %cst_28 = arith.constant dense<0.000000e+00> : vector<8xf32>
      %81 = vector.multi_reduction <add>, %80, %cst_28 [1] : vector<8x128xf32> to vector<8xf32>
      %82 = vector.shape_cast %81 : vector<8xf32> to vector<8x1xf32>
      %cst_29 = arith.constant 9.600000e+01 : f32
      %83 = vector.broadcast %cst_29 : f32 to vector<8x1xf32>
      %84 = arith.mulf %83, %77 : vector<8x1xf32>
      %85 = arith.mulf %84, %77 : vector<8x1xf32>
      %86 = arith.subf %82, %85 : vector<8x1xf32>
      %cst_30 = arith.constant 3.125000e-02 : f32
      %87 = vector.broadcast %cst_30 : f32 to vector<8x1xf32>
      %88 = arith.mulf %86, %87 : vector<8x1xf32>
      %cst_31 = arith.constant 1.000000e-01 : f32
      %89 = vector.broadcast %cst_31 : f32 to vector<8x1xf32>
      %90 = arith.addf %88, %89 : vector<8x1xf32>
      %91 = math.rsqrt %90 : vector<8x1xf32>
      %92 = vector.broadcast %91 : vector<8x1xf32> to vector<8x128xf32>
      %93 = arith.mulf %79, %92 : vector<8x128xf32>
      %94 = vector.broadcast %72 : vector<1x128xf32> to vector<8x128xf32>
      %95 = arith.mulf %93, %94 : vector<8x128xf32>
      %96 = vector.broadcast %73 : vector<1x128xf32> to vector<8x128xf32>
      %97 = arith.addf %95, %96 : vector<8x128xf32>
      %98 = arith.addf %57, %97 : vector<8x128xf32>
      %99 = arith.truncf %97 : vector<8x128xf32> to vector<8x128xbf16>
      %c1 = arith.constant 1 : index
      %c0_32 = arith.constant 0 : index
      %c0_33 = arith.constant 0 : index
      %100 = vector.load %arg4[%c1, %c0_32, %c0_33] : memref<4x128x128xbf16, #tpu.memory_space<vmem>>, vector<1x128x128xbf16>
      %101 = vector.shape_cast %100 : vector<1x128x128xbf16> to vector<128x128xbf16>
      %cst_34 = arith.constant dense<0.000000e+00> : vector<8x128xf32>
      %102 = tpu.matmul %99, %101, %cst_34 {dimension_numbers = #tpu.dot_dimension_numbers<[1], [0], [0], [1], [0, 0, 1, 1], [], []>} : vector<8x128xbf16>, vector<128x128xbf16>, vector<8x128xf32> -> vector<8x128xf32>
      %103 = vector.extract_strided_slice %12 {offsets = [2, 0], sizes = [1, 128], strides = [1, 1]} : vector<15x128xf32> to vector<1x128xf32>
      %104 = vector.broadcast %103 : vector<1x128xf32> to vector<8x128xf32>
      %105 = arith.addf %102, %104 : vector<8x128xf32>
      %106 = arith.addf %105, %98 : vector<8x128xf32>
      %107 = arith.negf %106 : vector<8x128xf32>
      %108 = math.exp %107 : vector<8x128xf32>
      %cst_35 = arith.constant 1.000000e+00 : f32
      %109 = vector.broadcast %cst_35 : f32 to vector<8x128xf32>
      %110 = arith.addf %109, %108 : vector<8x128xf32>
      %111 = arith.divf %109, %110 : vector<8x128xf32>
      %112 = arith.mulf %106, %111 : vector<8x128xf32>
      %113 = vector.extract_strided_slice %12 {offsets = [7, 0], sizes = [1, 128], strides = [1, 1]} : vector<15x128xf32> to vector<1x128xf32>
      %114 = vector.extract_strided_slice %12 {offsets = [12, 0], sizes = [1, 128], strides = [1, 1]} : vector<15x128xf32> to vector<1x128xf32>
      %cst_36 = arith.constant dense<0.000000e+00> : vector<8xf32>
      %115 = vector.multi_reduction <add>, %112, %cst_36 [1] : vector<8x128xf32> to vector<8xf32>
      %116 = vector.shape_cast %115 : vector<8xf32> to vector<8x1xf32>
      %cst_37 = arith.constant 3.125000e-02 : f32
      %117 = vector.broadcast %cst_37 : f32 to vector<8x1xf32>
      %118 = arith.mulf %116, %117 : vector<8x1xf32>
      %119 = vector.broadcast %118 : vector<8x1xf32> to vector<8x128xf32>
      %120 = arith.subf %112, %119 : vector<8x128xf32>
      %121 = arith.mulf %120, %120 : vector<8x128xf32>
      %cst_38 = arith.constant dense<0.000000e+00> : vector<8xf32>
      %122 = vector.multi_reduction <add>, %121, %cst_38 [1] : vector<8x128xf32> to vector<8xf32>
      %123 = vector.shape_cast %122 : vector<8xf32> to vector<8x1xf32>
      %cst_39 = arith.constant 9.600000e+01 : f32
      %124 = vector.broadcast %cst_39 : f32 to vector<8x1xf32>
      %125 = arith.mulf %124, %118 : vector<8x1xf32>
      %126 = arith.mulf %125, %118 : vector<8x1xf32>
      %127 = arith.subf %123, %126 : vector<8x1xf32>
      %cst_40 = arith.constant 3.125000e-02 : f32
      %128 = vector.broadcast %cst_40 : f32 to vector<8x1xf32>
      %129 = arith.mulf %127, %128 : vector<8x1xf32>
      %cst_41 = arith.constant 1.000000e-01 : f32
      %130 = vector.broadcast %cst_41 : f32 to vector<8x1xf32>
      %131 = arith.addf %129, %130 : vector<8x1xf32>
      %132 = math.rsqrt %131 : vector<8x1xf32>
      %133 = vector.broadcast %132 : vector<8x1xf32> to vector<8x128xf32>
      %134 = arith.mulf %120, %133 : vector<8x128xf32>
      %135 = vector.broadcast %113 : vector<1x128xf32> to vector<8x128xf32>
      %136 = arith.mulf %134, %135 : vector<8x128xf32>
      %137 = vector.broadcast %114 : vector<1x128xf32> to vector<8x128xf32>
      %138 = arith.addf %136, %137 : vector<8x128xf32>
      %139 = arith.addf %98, %138 : vector<8x128xf32>
      %140 = arith.truncf %138 : vector<8x128xf32> to vector<8x128xbf16>
      %c2 = arith.constant 2 : index
      %c0_42 = arith.constant 0 : index
      %c0_43 = arith.constant 0 : index
      %141 = vector.load %arg4[%c2, %c0_42, %c0_43] : memref<4x128x128xbf16, #tpu.memory_space<vmem>>, vector<1x128x128xbf16>
      %142 = vector.shape_cast %141 : vector<1x128x128xbf16> to vector<128x128xbf16>
      %cst_44 = arith.constant dense<0.000000e+00> : vector<8x128xf32>
      %143 = tpu.matmul %140, %142, %cst_44 {dimension_numbers = #tpu.dot_dimension_numbers<[1], [0], [0], [1], [0, 0, 1, 1], [], []>} : vector<8x128xbf16>, vector<128x128xbf16>, vector<8x128xf32> -> vector<8x128xf32>
      %144 = vector.extract_strided_slice %12 {offsets = [3, 0], sizes = [1, 128], strides = [1, 1]} : vector<15x128xf32> to vector<1x128xf32>
      %145 = vector.broadcast %144 : vector<1x128xf32> to vector<8x128xf32>
      %146 = arith.addf %143, %145 : vector<8x128xf32>
      %147 = arith.addf %146, %139 : vector<8x128xf32>
      %148 = arith.negf %147 : vector<8x128xf32>
      %149 = math.exp %148 : vector<8x128xf32>
      %cst_45 = arith.constant 1.000000e+00 : f32
      %150 = vector.broadcast %cst_45 : f32 to vector<8x128xf32>
      %151 = arith.addf %150, %149 : vector<8x128xf32>
      %152 = arith.divf %150, %151 : vector<8x128xf32>
      %153 = arith.mulf %147, %152 : vector<8x128xf32>
      %154 = vector.extract_strided_slice %12 {offsets = [8, 0], sizes = [1, 128], strides = [1, 1]} : vector<15x128xf32> to vector<1x128xf32>
      %155 = vector.extract_strided_slice %12 {offsets = [13, 0], sizes = [1, 128], strides = [1, 1]} : vector<15x128xf32> to vector<1x128xf32>
      %cst_46 = arith.constant dense<0.000000e+00> : vector<8xf32>
      %156 = vector.multi_reduction <add>, %153, %cst_46 [1] : vector<8x128xf32> to vector<8xf32>
      %157 = vector.shape_cast %156 : vector<8xf32> to vector<8x1xf32>
      %cst_47 = arith.constant 3.125000e-02 : f32
      %158 = vector.broadcast %cst_47 : f32 to vector<8x1xf32>
      %159 = arith.mulf %157, %158 : vector<8x1xf32>
      %160 = vector.broadcast %159 : vector<8x1xf32> to vector<8x128xf32>
      %161 = arith.subf %153, %160 : vector<8x128xf32>
      %162 = arith.mulf %161, %161 : vector<8x128xf32>
      %cst_48 = arith.constant dense<0.000000e+00> : vector<8xf32>
      %163 = vector.multi_reduction <add>, %162, %cst_48 [1] : vector<8x128xf32> to vector<8xf32>
      %164 = vector.shape_cast %163 : vector<8xf32> to vector<8x1xf32>
      %cst_49 = arith.constant 9.600000e+01 : f32
      %165 = vector.broadcast %cst_49 : f32 to vector<8x1xf32>
      %166 = arith.mulf %165, %159 : vector<8x1xf32>
      %167 = arith.mulf %166, %159 : vector<8x1xf32>
      %168 = arith.subf %164, %167 : vector<8x1xf32>
      %cst_50 = arith.constant 3.125000e-02 : f32
      %169 = vector.broadcast %cst_50 : f32 to vector<8x1xf32>
      %170 = arith.mulf %168, %169 : vector<8x1xf32>
      %cst_51 = arith.constant 1.000000e-01 : f32
      %171 = vector.broadcast %cst_51 : f32 to vector<8x1xf32>
      %172 = arith.addf %170, %171 : vector<8x1xf32>
      %173 = math.rsqrt %172 : vector<8x1xf32>
      %174 = vector.broadcast %173 : vector<8x1xf32> to vector<8x128xf32>
      %175 = arith.mulf %161, %174 : vector<8x128xf32>
      %176 = vector.broadcast %154 : vector<1x128xf32> to vector<8x128xf32>
      %177 = arith.mulf %175, %176 : vector<8x128xf32>
      %178 = vector.broadcast %155 : vector<1x128xf32> to vector<8x128xf32>
      %179 = arith.addf %177, %178 : vector<8x128xf32>
      %180 = arith.addf %139, %179 : vector<8x128xf32>
      %181 = arith.truncf %179 : vector<8x128xf32> to vector<8x128xbf16>
      %c3 = arith.constant 3 : index
      %c0_52 = arith.constant 0 : index
      %c0_53 = arith.constant 0 : index
      %182 = vector.load %arg4[%c3, %c0_52, %c0_53] : memref<4x128x128xbf16, #tpu.memory_space<vmem>>, vector<1x128x128xbf16>
      %183 = vector.shape_cast %182 : vector<1x128x128xbf16> to vector<128x128xbf16>
      %cst_54 = arith.constant dense<0.000000e+00> : vector<8x128xf32>
      %184 = tpu.matmul %181, %183, %cst_54 {dimension_numbers = #tpu.dot_dimension_numbers<[1], [0], [0], [1], [0, 0, 1, 1], [], []>} : vector<8x128xbf16>, vector<128x128xbf16>, vector<8x128xf32> -> vector<8x128xf32>
      %185 = vector.extract_strided_slice %12 {offsets = [4, 0], sizes = [1, 128], strides = [1, 1]} : vector<15x128xf32> to vector<1x128xf32>
      %186 = vector.broadcast %185 : vector<1x128xf32> to vector<8x128xf32>
      %187 = arith.addf %184, %186 : vector<8x128xf32>
      %188 = arith.addf %187, %180 : vector<8x128xf32>
      %189 = arith.negf %188 : vector<8x128xf32>
      %190 = math.exp %189 : vector<8x128xf32>
      %cst_55 = arith.constant 1.000000e+00 : f32
      %191 = vector.broadcast %cst_55 : f32 to vector<8x128xf32>
      %192 = arith.addf %191, %190 : vector<8x128xf32>
      %193 = arith.divf %191, %192 : vector<8x128xf32>
      %194 = arith.mulf %188, %193 : vector<8x128xf32>
      %195 = vector.extract_strided_slice %12 {offsets = [9, 0], sizes = [1, 128], strides = [1, 1]} : vector<15x128xf32> to vector<1x128xf32>
      %196 = vector.extract_strided_slice %12 {offsets = [14, 0], sizes = [1, 128], strides = [1, 1]} : vector<15x128xf32> to vector<1x128xf32>
      %cst_56 = arith.constant dense<0.000000e+00> : vector<8xf32>
      %197 = vector.multi_reduction <add>, %194, %cst_56 [1] : vector<8x128xf32> to vector<8xf32>
      %198 = vector.shape_cast %197 : vector<8xf32> to vector<8x1xf32>
      %cst_57 = arith.constant 3.125000e-02 : f32
      %199 = vector.broadcast %cst_57 : f32 to vector<8x1xf32>
      %200 = arith.mulf %198, %199 : vector<8x1xf32>
      %201 = vector.broadcast %200 : vector<8x1xf32> to vector<8x128xf32>
      %202 = arith.subf %194, %201 : vector<8x128xf32>
      %203 = arith.mulf %202, %202 : vector<8x128xf32>
      %cst_58 = arith.constant dense<0.000000e+00> : vector<8xf32>
      %204 = vector.multi_reduction <add>, %203, %cst_58 [1] : vector<8x128xf32> to vector<8xf32>
      %205 = vector.shape_cast %204 : vector<8xf32> to vector<8x1xf32>
      %cst_59 = arith.constant 9.600000e+01 : f32
      %206 = vector.broadcast %cst_59 : f32 to vector<8x1xf32>
      %207 = arith.mulf %206, %200 : vector<8x1xf32>
      %208 = arith.mulf %207, %200 : vector<8x1xf32>
      %209 = arith.subf %205, %208 : vector<8x1xf32>
      %cst_60 = arith.constant 3.125000e-02 : f32
      %210 = vector.broadcast %cst_60 : f32 to vector<8x1xf32>
      %211 = arith.mulf %209, %210 : vector<8x1xf32>
      %cst_61 = arith.constant 1.000000e-01 : f32
      %212 = vector.broadcast %cst_61 : f32 to vector<8x1xf32>
      %213 = arith.addf %211, %212 : vector<8x1xf32>
      %214 = math.rsqrt %213 : vector<8x1xf32>
      %215 = vector.broadcast %214 : vector<8x1xf32> to vector<8x128xf32>
      %216 = arith.mulf %202, %215 : vector<8x128xf32>
      %217 = vector.broadcast %195 : vector<1x128xf32> to vector<8x128xf32>
      %218 = arith.mulf %216, %217 : vector<8x128xf32>
      %219 = vector.broadcast %196 : vector<1x128xf32> to vector<8x128xf32>
      %220 = arith.addf %218, %219 : vector<8x128xf32>
      %221 = arith.truncf %220 : vector<8x128xf32> to vector<8x128xbf16>
      %c0_62 = arith.constant 0 : index
      %c0_63 = arith.constant 0 : index
      %222 = vector.load %arg5[%c0_62, %c0_63] : memref<128x256xbf16, #tpu.memory_space<vmem>>, vector<128x256xbf16>
      %cst_64 = arith.constant dense<0.000000e+00> : vector<8x256xf32>
      %223 = tpu.matmul %221, %222, %cst_64 {dimension_numbers = #tpu.dot_dimension_numbers<[1], [0], [0], [1], [0, 0, 1, 1], [], []>} : vector<8x128xbf16>, vector<128x256xbf16>, vector<8x256xf32> -> vector<8x256xf32>
      %224 = vector.broadcast %13 : vector<1x256xf32> to vector<8x256xf32>
      %225 = arith.addf %223, %224 : vector<8x256xf32>
      %c0_65 = arith.constant 0 : index
      %c0_66 = arith.constant 0 : index
      %226 = vector.load %arg8[%c0_65, %c0_66] : memref<16x256xf32, #tpu.memory_space<vmem>>, vector<8x256xf32>
      tpu.vector_store %arg8[%c0_65, %c0_66], %225 {strides = array<i32>} : memref<16x256xf32, #tpu.memory_space<vmem>>, vector<8x256xf32>,
      %c8 = arith.constant 8 : index
      %c0_67 = arith.constant 0 : index
      %227 = vector.load %arg10[%c8, %c0_67] : memref<16x128xf32, #tpu.memory_space<vmem>>, vector<8x128xf32>
      %cst_68 = arith.constant dense<0.000000e+00> : vector<8xf32>
      %228 = vector.multi_reduction <add>, %227, %cst_68 [1] : vector<8x128xf32> to vector<8xf32>
      %229 = vector.shape_cast %228 : vector<8xf32> to vector<8x1xf32>
      %cst_69 = arith.constant 1.000000e-30 : f32
      %230 = vector.broadcast %cst_69 : f32 to vector<8x1xf32>
      %231 = arith.maximumf %229, %230 : vector<8x1xf32>
      %232 = math.rsqrt %231 : vector<8x1xf32>
      %c8_70 = arith.constant 8 : index
      %c0_71 = arith.constant 0 : index
      %233 = vector.load %arg9[%c8_70, %c0_71] : memref<16x128xf32, #tpu.memory_space<vmem>>, vector<8x128xf32>
      %234 = vector.broadcast %232 : vector<8x1xf32> to vector<8x128xf32>
      %235 = arith.mulf %233, %234 : vector<8x128xf32>
      %236 = vector.extract_strided_slice %12 {offsets = [0, 0], sizes = [1, 128], strides = [1, 1]} : vector<15x128xf32> to vector<1x128xf32>
      %237 = vector.broadcast %236 : vector<1x128xf32> to vector<8x128xf32>
      %238 = arith.addf %235, %237 : vector<8x128xf32>
      %239 = arith.negf %238 : vector<8x128xf32>
      %240 = math.exp %239 : vector<8x128xf32>
      %cst_72 = arith.constant 1.000000e+00 : f32
      %241 = vector.broadcast %cst_72 : f32 to vector<8x128xf32>
      %242 = arith.addf %241, %240 : vector<8x128xf32>
      %243 = arith.divf %241, %242 : vector<8x128xf32>
      %244 = arith.mulf %238, %243 : vector<8x128xf32>
      %245 = vector.extract_strided_slice %12 {offsets = [5, 0], sizes = [1, 128], strides = [1, 1]} : vector<15x128xf32> to vector<1x128xf32>
      %246 = vector.extract_strided_slice %12 {offsets = [10, 0], sizes = [1, 128], strides = [1, 1]} : vector<15x128xf32> to vector<1x128xf32>
      %cst_73 = arith.constant dense<0.000000e+00> : vector<8xf32>
      %247 = vector.multi_reduction <add>, %244, %cst_73 [1] : vector<8x128xf32> to vector<8xf32>
      %248 = vector.shape_cast %247 : vector<8xf32> to vector<8x1xf32>
      %cst_74 = arith.constant 3.125000e-02 : f32
      %249 = vector.broadcast %cst_74 : f32 to vector<8x1xf32>
      %250 = arith.mulf %248, %249 : vector<8x1xf32>
      %251 = vector.broadcast %250 : vector<8x1xf32> to vector<8x128xf32>
      %252 = arith.subf %244, %251 : vector<8x128xf32>
      %253 = arith.mulf %252, %252 : vector<8x128xf32>
      %cst_75 = arith.constant dense<0.000000e+00> : vector<8xf32>
      %254 = vector.multi_reduction <add>, %253, %cst_75 [1] : vector<8x128xf32> to vector<8xf32>
      %255 = vector.shape_cast %254 : vector<8xf32> to vector<8x1xf32>
      %cst_76 = arith.constant 9.600000e+01 : f32
      %256 = vector.broadcast %cst_76 : f32 to vector<8x1xf32>
      %257 = arith.mulf %256, %250 : vector<8x1xf32>
      %258 = arith.mulf %257, %250 : vector<8x1xf32>
      %259 = arith.subf %255, %258 : vector<8x1xf32>
      %cst_77 = arith.constant 3.125000e-02 : f32
      %260 = vector.broadcast %cst_77 : f32 to vector<8x1xf32>
      %261 = arith.mulf %259, %260 : vector<8x1xf32>
      %cst_78 = arith.constant 1.000000e-01 : f32
      %262 = vector.broadcast %cst_78 : f32 to vector<8x1xf32>
      %263 = arith.addf %261, %262 : vector<8x1xf32>
      %264 = math.rsqrt %263 : vector<8x1xf32>
      %265 = vector.broadcast %264 : vector<8x1xf32> to vector<8x128xf32>
      %266 = arith.mulf %252, %265 : vector<8x128xf32>
      %267 = vector.broadcast %245 : vector<1x128xf32> to vector<8x128xf32>
      %268 = arith.mulf %266, %267 : vector<8x128xf32>
      %269 = vector.broadcast %246 : vector<1x128xf32> to vector<8x128xf32>
      %270 = arith.addf %268, %269 : vector<8x128xf32>
      %271 = arith.truncf %270 : vector<8x128xf32> to vector<8x128xbf16>
      %c0_79 = arith.constant 0 : index
      %c0_80 = arith.constant 0 : index
      %c0_81 = arith.constant 0 : index
      %272 = vector.load %arg4[%c0_79, %c0_80, %c0_81] : memref<4x128x128xbf16, #tpu.memory_space<vmem>>, vector<1x128x128xbf16>
      %273 = vector.shape_cast %272 : vector<1x128x128xbf16> to vector<128x128xbf16>
      %cst_82 = arith.constant dense<0.000000e+00> : vector<8x128xf32>
      %274 = tpu.matmul %271, %273, %cst_82 {dimension_numbers = #tpu.dot_dimension_numbers<[1], [0], [0], [1], [0, 0, 1, 1], [], []>} : vector<8x128xbf16>, vector<128x128xbf16>, vector<8x128xf32> -> vector<8x128xf32>
      %275 = vector.extract_strided_slice %12 {offsets = [1, 0], sizes = [1, 128], strides = [1, 1]} : vector<15x128xf32> to vector<1x128xf32>
      %276 = vector.broadcast %275 : vector<1x128xf32> to vector<8x128xf32>
      %277 = arith.addf %274, %276 : vector<8x128xf32>
      %278 = arith.addf %277, %270 : vector<8x128xf32>
      %279 = arith.negf %278 : vector<8x128xf32>
      %280 = math.exp %279 : vector<8x128xf32>
      %cst_83 = arith.constant 1.000000e+00 : f32
      %281 = vector.broadcast %cst_83 : f32 to vector<8x128xf32>
      %282 = arith.addf %281, %280 : vector<8x128xf32>
      %283 = arith.divf %281, %282 : vector<8x128xf32>
      %284 = arith.mulf %278, %283 : vector<8x128xf32>
      %285 = vector.extract_strided_slice %12 {offsets = [6, 0], sizes = [1, 128], strides = [1, 1]} : vector<15x128xf32> to vector<1x128xf32>
      %286 = vector.extract_strided_slice %12 {offsets = [11, 0], sizes = [1, 128], strides = [1, 1]} : vector<15x128xf32> to vector<1x128xf32>
      %cst_84 = arith.constant dense<0.000000e+00> : vector<8xf32>
      %287 = vector.multi_reduction <add>, %284, %cst_84 [1] : vector<8x128xf32> to vector<8xf32>
      %288 = vector.shape_cast %287 : vector<8xf32> to vector<8x1xf32>
      %cst_85 = arith.constant 3.125000e-02 : f32
      %289 = vector.broadcast %cst_85 : f32 to vector<8x1xf32>
      %290 = arith.mulf %288, %289 : vector<8x1xf32>
      %291 = vector.broadcast %290 : vector<8x1xf32> to vector<8x128xf32>
      %292 = arith.subf %284, %291 : vector<8x128xf32>
      %293 = arith.mulf %292, %292 : vector<8x128xf32>
      %cst_86 = arith.constant dense<0.000000e+00> : vector<8xf32>
      %294 = vector.multi_reduction <add>, %293, %cst_86 [1] : vector<8x128xf32> to vector<8xf32>
      %295 = vector.shape_cast %294 : vector<8xf32> to vector<8x1xf32>
      %cst_87 = arith.constant 9.600000e+01 : f32
      %296 = vector.broadcast %cst_87 : f32 to vector<8x1xf32>
      %297 = arith.mulf %296, %290 : vector<8x1xf32>
      %298 = arith.mulf %297, %290 : vector<8x1xf32>
      %299 = arith.subf %295, %298 : vector<8x1xf32>
      %cst_88 = arith.constant 3.125000e-02 : f32
      %300 = vector.broadcast %cst_88 : f32 to vector<8x1xf32>
      %301 = arith.mulf %299, %300 : vector<8x1xf32>
      %cst_89 = arith.constant 1.000000e-01 : f32
      %302 = vector.broadcast %cst_89 : f32 to vector<8x1xf32>
      %303 = arith.addf %301, %302 : vector<8x1xf32>
      %304 = math.rsqrt %303 : vector<8x1xf32>
      %305 = vector.broadcast %304 : vector<8x1xf32> to vector<8x128xf32>
      %306 = arith.mulf %292, %305 : vector<8x128xf32>
      %307 = vector.broadcast %285 : vector<1x128xf32> to vector<8x128xf32>
      %308 = arith.mulf %306, %307 : vector<8x128xf32>
      %309 = vector.broadcast %286 : vector<1x128xf32> to vector<8x128xf32>
      %310 = arith.addf %308, %309 : vector<8x128xf32>
      %311 = arith.addf %270, %310 : vector<8x128xf32>
      %312 = arith.truncf %310 : vector<8x128xf32> to vector<8x128xbf16>
      %c1_90 = arith.constant 1 : index
      %c0_91 = arith.constant 0 : index
      %c0_92 = arith.constant 0 : index
      %313 = vector.load %arg4[%c1_90, %c0_91, %c0_92] : memref<4x128x128xbf16, #tpu.memory_space<vmem>>, vector<1x128x128xbf16>
      %314 = vector.shape_cast %313 : vector<1x128x128xbf16> to vector<128x128xbf16>
      %cst_93 = arith.constant dense<0.000000e+00> : vector<8x128xf32>
      %315 = tpu.matmul %312, %314, %cst_93 {dimension_numbers = #tpu.dot_dimension_numbers<[1], [0], [0], [1], [0, 0, 1, 1], [], []>} : vector<8x128xbf16>, vector<128x128xbf16>, vector<8x128xf32> -> vector<8x128xf32>
      %316 = vector.extract_strided_slice %12 {offsets = [2, 0], sizes = [1, 128], strides = [1, 1]} : vector<15x128xf32> to vector<1x128xf32>
      %317 = vector.broadcast %316 : vector<1x128xf32> to vector<8x128xf32>
      %318 = arith.addf %315, %317 : vector<8x128xf32>
      %319 = arith.addf %318, %311 : vector<8x128xf32>
      %320 = arith.negf %319 : vector<8x128xf32>
      %321 = math.exp %320 : vector<8x128xf32>
      %cst_94 = arith.constant 1.000000e+00 : f32
      %322 = vector.broadcast %cst_94 : f32 to vector<8x128xf32>
      %323 = arith.addf %322, %321 : vector<8x128xf32>
      %324 = arith.divf %322, %323 : vector<8x128xf32>
      %325 = arith.mulf %319, %324 : vector<8x128xf32>
      %326 = vector.extract_strided_slice %12 {offsets = [7, 0], sizes = [1, 128], strides = [1, 1]} : vector<15x128xf32> to vector<1x128xf32>
      %327 = vector.extract_strided_slice %12 {offsets = [12, 0], sizes = [1, 128], strides = [1, 1]} : vector<15x128xf32> to vector<1x128xf32>
      %cst_95 = arith.constant dense<0.000000e+00> : vector<8xf32>
      %328 = vector.multi_reduction <add>, %325, %cst_95 [1] : vector<8x128xf32> to vector<8xf32>
      %329 = vector.shape_cast %328 : vector<8xf32> to vector<8x1xf32>
      %cst_96 = arith.constant 3.125000e-02 : f32
      %330 = vector.broadcast %cst_96 : f32 to vector<8x1xf32>
      %331 = arith.mulf %329, %330 : vector<8x1xf32>
      %332 = vector.broadcast %331 : vector<8x1xf32> to vector<8x128xf32>
      %333 = arith.subf %325, %332 : vector<8x128xf32>
      %334 = arith.mulf %333, %333 : vector<8x128xf32>
      %cst_97 = arith.constant dense<0.000000e+00> : vector<8xf32>
      %335 = vector.multi_reduction <add>, %334, %cst_97 [1] : vector<8x128xf32> to vector<8xf32>
      %336 = vector.shape_cast %335 : vector<8xf32> to vector<8x1xf32>
      %cst_98 = arith.constant 9.600000e+01 : f32
      %337 = vector.broadcast %cst_98 : f32 to vector<8x1xf32>
      %338 = arith.mulf %337, %331 : vector<8x1xf32>
      %339 = arith.mulf %338, %331 : vector<8x1xf32>
      %340 = arith.subf %336, %339 : vector<8x1xf32>
      %cst_99 = arith.constant 3.125000e-02 : f32
      %341 = vector.broadcast %cst_99 : f32 to vector<8x1xf32>
      %342 = arith.mulf %340, %341 : vector<8x1xf32>
      %cst_100 = arith.constant 1.000000e-01 : f32
      %343 = vector.broadcast %cst_100 : f32 to vector<8x1xf32>
      %344 = arith.addf %342, %343 : vector<8x1xf32>
      %345 = math.rsqrt %344 : vector<8x1xf32>
      %346 = vector.broadcast %345 : vector<8x1xf32> to vector<8x128xf32>
      %347 = arith.mulf %333, %346 : vector<8x128xf32>
      %348 = vector.broadcast %326 : vector<1x128xf32> to vector<8x128xf32>
      %349 = arith.mulf %347, %348 : vector<8x128xf32>
      %350 = vector.broadcast %327 : vector<1x128xf32> to vector<8x128xf32>
      %351 = arith.addf %349, %350 : vector<8x128xf32>
      %352 = arith.addf %311, %351 : vector<8x128xf32>
      %353 = arith.truncf %351 : vector<8x128xf32> to vector<8x128xbf16>
      %c2_101 = arith.constant 2 : index
      %c0_102 = arith.constant 0 : index
      %c0_103 = arith.constant 0 : index
      %354 = vector.load %arg4[%c2_101, %c0_102, %c0_103] : memref<4x128x128xbf16, #tpu.memory_space<vmem>>, vector<1x128x128xbf16>
      %355 = vector.shape_cast %354 : vector<1x128x128xbf16> to vector<128x128xbf16>
      %cst_104 = arith.constant dense<0.000000e+00> : vector<8x128xf32>
      %356 = tpu.matmul %353, %355, %cst_104 {dimension_numbers = #tpu.dot_dimension_numbers<[1], [0], [0], [1], [0, 0, 1, 1], [], []>} : vector<8x128xbf16>, vector<128x128xbf16>, vector<8x128xf32> -> vector<8x128xf32>
      %357 = vector.extract_strided_slice %12 {offsets = [3, 0], sizes = [1, 128], strides = [1, 1]} : vector<15x128xf32> to vector<1x128xf32>
      %358 = vector.broadcast %357 : vector<1x128xf32> to vector<8x128xf32>
      %359 = arith.addf %356, %358 : vector<8x128xf32>
      %360 = arith.addf %359, %352 : vector<8x128xf32>
      %361 = arith.negf %360 : vector<8x128xf32>
      %362 = math.exp %361 : vector<8x128xf32>
      %cst_105 = arith.constant 1.000000e+00 : f32
      %363 = vector.broadcast %cst_105 : f32 to vector<8x128xf32>
      %364 = arith.addf %363, %362 : vector<8x128xf32>
      %365 = arith.divf %363, %364 : vector<8x128xf32>
      %366 = arith.mulf %360, %365 : vector<8x128xf32>
      %367 = vector.extract_strided_slice %12 {offsets = [8, 0], sizes = [1, 128], strides = [1, 1]} : vector<15x128xf32> to vector<1x128xf32>
      %368 = vector.extract_strided_slice %12 {offsets = [13, 0], sizes = [1, 128], strides = [1, 1]} : vector<15x128xf32> to vector<1x128xf32>
      %cst_106 = arith.constant dense<0.000000e+00> : vector<8xf32>
      %369 = vector.multi_reduction <add>, %366, %cst_106 [1] : vector<8x128xf32> to vector<8xf32>
      %370 = vector.shape_cast %369 : vector<8xf32> to vector<8x1xf32>
      %cst_107 = arith.constant 3.125000e-02 : f32
      %371 = vector.broadcast %cst_107 : f32 to vector<8x1xf32>
      %372 = arith.mulf %370, %371 : vector<8x1xf32>
      %373 = vector.broadcast %372 : vector<8x1xf32> to vector<8x128xf32>
      %374 = arith.subf %366, %373 : vector<8x128xf32>
      %375 = arith.mulf %374, %374 : vector<8x128xf32>
      %cst_108 = arith.constant dense<0.000000e+00> : vector<8xf32>
      %376 = vector.multi_reduction <add>, %375, %cst_108 [1] : vector<8x128xf32> to vector<8xf32>
      %377 = vector.shape_cast %376 : vector<8xf32> to vector<8x1xf32>
      %cst_109 = arith.constant 9.600000e+01 : f32
      %378 = vector.broadcast %cst_109 : f32 to vector<8x1xf32>
      %379 = arith.mulf %378, %372 : vector<8x1xf32>
      %380 = arith.mulf %379, %372 : vector<8x1xf32>
      %381 = arith.subf %377, %380 : vector<8x1xf32>
      %cst_110 = arith.constant 3.125000e-02 : f32
      %382 = vector.broadcast %cst_110 : f32 to vector<8x1xf32>
      %383 = arith.mulf %381, %382 : vector<8x1xf32>
      %cst_111 = arith.constant 1.000000e-01 : f32
      %384 = vector.broadcast %cst_111 : f32 to vector<8x1xf32>
      %385 = arith.addf %383, %384 : vector<8x1xf32>
      %386 = math.rsqrt %385 : vector<8x1xf32>
      %387 = vector.broadcast %386 : vector<8x1xf32> to vector<8x128xf32>
      %388 = arith.mulf %374, %387 : vector<8x128xf32>
      %389 = vector.broadcast %367 : vector<1x128xf32> to vector<8x128xf32>
      %390 = arith.mulf %388, %389 : vector<8x128xf32>
      %391 = vector.broadcast %368 : vector<1x128xf32> to vector<8x128xf32>
      %392 = arith.addf %390, %391 : vector<8x128xf32>
      %393 = arith.addf %352, %392 : vector<8x128xf32>
      %394 = arith.truncf %392 : vector<8x128xf32> to vector<8x128xbf16>
      %c3_112 = arith.constant 3 : index
      %c0_113 = arith.constant 0 : index
      %c0_114 = arith.constant 0 : index
      %395 = vector.load %arg4[%c3_112, %c0_113, %c0_114] : memref<4x128x128xbf16, #tpu.memory_space<vmem>>, vector<1x128x128xbf16>
      %396 = vector.shape_cast %395 : vector<1x128x128xbf16> to vector<128x128xbf16>
      %cst_115 = arith.constant dense<0.000000e+00> : vector<8x128xf32>
      %397 = tpu.matmul %394, %396, %cst_115 {dimension_numbers = #tpu.dot_dimension_numbers<[1], [0], [0], [1], [0, 0, 1, 1], [], []>} : vector<8x128xbf16>, vector<128x128xbf16>, vector<8x128xf32> -> vector<8x128xf32>
      %398 = vector.extract_strided_slice %12 {offsets = [4, 0], sizes = [1, 128], strides = [1, 1]} : vector<15x128xf32> to vector<1x128xf32>
      %399 = vector.broadcast %398 : vector<1x128xf32> to vector<8x128xf32>
      %400 = arith.addf %397, %399 : vector<8x128xf32>
      %401 = arith.addf %400, %393 : vector<8x128xf32>
      %402 = arith.negf %401 : vector<8x128xf32>
      %403 = math.exp %402 : vector<8x128xf32>
      %cst_116 = arith.constant 1.000000e+00 : f32
      %404 = vector.broadcast %cst_116 : f32 to vector<8x128xf32>
      %405 = arith.addf %404, %403 : vector<8x128xf32>
      %406 = arith.divf %404, %405 : vector<8x128xf32>
      %407 = arith.mulf %401, %406 : vector<8x128xf32>
      %408 = vector.extract_strided_slice %12 {offsets = [9, 0], sizes = [1, 128], strides = [1, 1]} : vector<15x128xf32> to vector<1x128xf32>
      %409 = vector.extract_strided_slice %12 {offsets = [14, 0], sizes = [1, 128], strides = [1, 1]} : vector<15x128xf32> to vector<1x128xf32>
      %cst_117 = arith.constant dense<0.000000e+00> : vector<8xf32>
      %410 = vector.multi_reduction <add>, %407, %cst_117 [1] : vector<8x128xf32> to vector<8xf32>
      %411 = vector.shape_cast %410 : vector<8xf32> to vector<8x1xf32>
      %cst_118 = arith.constant 3.125000e-02 : f32
      %412 = vector.broadcast %cst_118 : f32 to vector<8x1xf32>
      %413 = arith.mulf %411, %412 : vector<8x1xf32>
      %414 = vector.broadcast %413 : vector<8x1xf32> to vector<8x128xf32>
      %415 = arith.subf %407, %414 : vector<8x128xf32>
      %416 = arith.mulf %415, %415 : vector<8x128xf32>
      %cst_119 = arith.constant dense<0.000000e+00> : vector<8xf32>
      %417 = vector.multi_reduction <add>, %416, %cst_119 [1] : vector<8x128xf32> to vector<8xf32>
      %418 = vector.shape_cast %417 : vector<8xf32> to vector<8x1xf32>
      %cst_120 = arith.constant 9.600000e+01 : f32
      %419 = vector.broadcast %cst_120 : f32 to vector<8x1xf32>
      %420 = arith.mulf %419, %413 : vector<8x1xf32>
      %421 = arith.mulf %420, %413 : vector<8x1xf32>
      %422 = arith.subf %418, %421 : vector<8x1xf32>
      %cst_121 = arith.constant 3.125000e-02 : f32
      %423 = vector.broadcast %cst_121 : f32 to vector<8x1xf32>
      %424 = arith.mulf %422, %423 : vector<8x1xf32>
      %cst_122 = arith.constant 1.000000e-01 : f32
      %425 = vector.broadcast %cst_122 : f32 to vector<8x1xf32>
      %426 = arith.addf %424, %425 : vector<8x1xf32>
      %427 = math.rsqrt %426 : vector<8x1xf32>
      %428 = vector.broadcast %427 : vector<8x1xf32> to vector<8x128xf32>
      %429 = arith.mulf %415, %428 : vector<8x128xf32>
      %430 = vector.broadcast %408 : vector<1x128xf32> to vector<8x128xf32>
      %431 = arith.mulf %429, %430 : vector<8x128xf32>
      %432 = vector.broadcast %409 : vector<1x128xf32> to vector<8x128xf32>
      %433 = arith.addf %431, %432 : vector<8x128xf32>
      %434 = arith.truncf %433 : vector<8x128xf32> to vector<8x128xbf16>
      %c0_123 = arith.constant 0 : index
      %c0_124 = arith.constant 0 : index
      %435 = vector.load %arg5[%c0_123, %c0_124] : memref<128x256xbf16, #tpu.memory_space<vmem>>, vector<128x256xbf16>
      %cst_125 = arith.constant dense<0.000000e+00> : vector<8x256xf32>
      %436 = tpu.matmul %434, %435, %cst_125 {dimension_numbers = #tpu.dot_dimension_numbers<[1], [0], [0], [1], [0, 0, 1, 1], [], []>} : vector<8x128xbf16>, vector<128x256xbf16>, vector<8x256xf32> -> vector<8x256xf32>
      %437 = vector.broadcast %13 : vector<1x256xf32> to vector<8x256xf32>
      %438 = arith.addf %436, %437 : vector<8x256xf32>
      %c8_126 = arith.constant 8 : index
      %c0_127 = arith.constant 0 : index
      %439 = vector.load %arg8[%c8_126, %c0_127] : memref<16x256xf32, #tpu.memory_space<vmem>>, vector<8x256xf32>
      tpu.vector_store %arg8[%c8_126, %c0_127], %438 {strides = array<i32>} : memref<16x256xf32, #tpu.memory_space<vmem>>, vector<8x256xf32>,
    } else {
    }
    return
  }
  func.func @transform_0(%arg0: i32, %arg1: i32) -> (i32, i32) {
    %c0_i32 = arith.constant 0 : i32
    return %arg0, %arg1 : i32, i32
  }
  func.func @transform_1(%arg0: i32, %arg1: i32) -> (i32, i32) {
    %c0_i32 = arith.constant 0 : i32
    %c0_i32_0 = arith.constant 0 : i32
    return %arg1, %c0_i32 : i32, i32
  }
  func.func @transform_2(%arg0: i32, %arg1: i32) -> (i32, i32, i32) {
    %c0_i32 = arith.constant 0 : i32
    %c0_i32_0 = arith.constant 0 : i32
    %c0_i32_1 = arith.constant 0 : i32
    %c0_i32_2 = arith.constant 0 : i32
    return %c0_i32, %c0_i32_0, %c0_i32_1 : i32, i32, i32
  }
  func.func @transform_3(%arg0: i32, %arg1: i32) -> (i32, i32) {
    %c0_i32 = arith.constant 0 : i32
    %c0_i32_0 = arith.constant 0 : i32
    %c0_i32_1 = arith.constant 0 : i32
    return %c0_i32, %c0_i32_0 : i32, i32
  }
  func.func @transform_4(%arg0: i32, %arg1: i32) -> (i32, i32) {
    %c0_i32 = arith.constant 0 : i32
    %c0_i32_0 = arith.constant 0 : i32
    %c0_i32_1 = arith.constant 0 : i32
    return %c0_i32, %c0_i32_0 : i32, i32
  }
  func.func @transform_5(%arg0: i32, %arg1: i32) -> (i32, i32) {
    %c0_i32 = arith.constant 0 : i32
    %c0_i32_0 = arith.constant 0 : i32
    %c0_i32_1 = arith.constant 0 : i32
    return %c0_i32, %c0_i32_0 : i32, i32
  }
  func.func @transform_6(%arg0: i32, %arg1: i32) -> (i32, i32) {
    %c0_i32 = arith.constant 0 : i32
    %c0_i32_0 = arith.constant 0 : i32
    return %arg0, %c0_i32 : i32, i32
  }
}

</mosaic_0001>

<bundles_post_ra>
// kernel: tpu_custom_call.1
= control target key start
LH: loop header
LB: loop body
LE: loop exit
PB: predicated region body
PF: predicated region fallthrough
CT: control target
= control target key end

     0   :  { %s3542_s0 = inlined_call_operand.hbm [shape: bf16[8,300], index: 0, kind: input, shape index: {}]   ;;  %s3543_s1 = inlined_call_operand.hbm [shape: bf16[384,128], index: 1, kind: input, shape index: {}]   ;;  %s3544_s2 = inlined_call_operand.hbm [shape: bf16[4,128,128], index: 2, kind: input, shape index: {}]   ;;  %s3545_s3 = inlined_call_operand.hbm [shape: bf16[128,256], index: 3, kind: input, shape index: {}]   ;;  %s3546_s4 = inlined_call_operand.hbm [shape: f32[15,128], index: 4, kind: input, shape index: {}]   ;;  %s3547_s5 = inlined_call_operand.vmem [shape: f32[1,256], index: 5, kind: input, shape index: {}]   ;;  %s3548_s6 = inlined_call_operand.hbm [shape: f32[16,256], index: 6, kind: output, shape index: {}]  }
   0x1   :  { %3550 = sst [smem:[#allocation21_spill]] %s3545_s3 }
   0x2   :  { %3551 = sst [smem:[#allocation22_spill]] %s3548_s6 }
   0x3   :  { %11 = vsyncpa [#allocation5], 0 }
   0x4   :  { %13 = vsyncpa [#allocation5 + $0x1], 0 }
   0x5   :  { %14 = vsyncpa [#allocation8], 0 }
   0x6   :  { %16 = vsyncpa [#allocation8 + $0x1], 0 }
   0x7   :  { %17 = vsyncpa [#allocation11], 0 }
   0x8   :  { %18 = vsyncpa [#allocation6], 0  ;;  %s3195_s21 = smov 0   ;;  %s3197_s22 = smov 0  }
   0x9   :  { %s3199_s23 = smov 0   ;;  %s3201_s24 = smov 0  }
   0xa   :  { %s3203_s25 = smov 0   ;;  %s3205_s26 = smov 0  }
   0xb LB: > { %s3224_s27 = sadd.s32 4294967295, %s3142_s26   ;;  %s33_s28 = sadd.s32 1, %s3138_s25  ;;  %s3142_s26 = sphi %s3205_s26, %s24_s26   ;;  %s3138_s25 = sphi %s3203_s25, %s3566_s25   ;;  %s3134_s24 = sphi %s3201_s24, %s3565_s24   ;;  %s3130_s23 = sphi %s3199_s23, %s3564_s23   ;;  %s3126_s22 = sphi %s3197_s22, %s3563_s22   ;;  %s3122_s21 = sphi %s3195_s21, %s3562_s21  }
   0xc   : > { %p34_p0 = scmp.ge.s32.totalorder %s33_s28, 3  ;;  %s45_s29 = sadd.s32 1, %s3130_s23 }
   0xd   : > { %p52_p1 = scmp.ne.s32.totalorder %s3130_s23, %s3126_s22  ;;  %p53_p2 = scmp.eq.s32.totalorder %s3142_s26, 0 }
   0xe   : > { %s3568_s28 = smov (%p34_p0, %s33_s28), 0  ;;  %p58_p4 = scmp.ne.s32.totalorder %s3126_s22, %s3122_s21 }
   0xf   : > { %3552 = sst [smem:[#allocation19_spill]] %s3568_s28  ;;  %p3233_p3 = por %p53_p2, %p52_p1 }
  0x10   : > { %s41_s7 = ssub.s32 %s3138_s25, %s3568_s28  ;;  %p59_p5 = scmp.eq.s32.totalorder %s3224_s27, 0 }
  0x11   : > { %p43_p6 = scmp.eq.s32.totalorder %s41_s7, 0  ;;  %p2140_p7 = scmp.ge.s32.totalorder %s3142_s26, 1 }
  0x12   : > { %p3244_p8 = por %p59_p5, %p58_p4  ;;  %p205_p9 = scmp.lt.s32.totalorder %s3142_s26, 4 }
  0x13   : > { %s3250_s9 = scalar_select %p43_p6, %s3130_s23, %s45_s29  }
  0x14   : > { %p3252_p10 = pnand %p2140_p7, %p205_p9  ;;  %s3557_s3 = sld [smem:[#allocation21_spill]] }
  0x15   : > { %3555 = sst [smem:[#allocation20_spill]] %s3250_s9  ;;  %s3144_s14 = smov [#allocation10]  }
  0x16   : > { %p2759_p11 = pneg %p3252_p10  ;;  %s232_s15 = sshll.u32 %s3144_s14, 4  ;;  %s233_s15 = int_to_ptr.vmem [resolvable:$true] %s232_s15 }
  0x17   : > { %s3145_s17 = smov 128   ;;  %s3146_s18 = smov 8  }
  0x18   : > { %p3263_p12 = pnand %p2759_p11, %p59_p5  ;;  %s216_s21 = sshll.u32 %s3544_s2, 4  ;;  %s217_s21 = int_to_ptr.hbm [resolvable:$true] %s216_s21 }
  0x19   : > { %s3147_s29 = smov [#allocation9]   ;;  %s244_s14 = sshll.u32 %s3546_s4, 4  ;;  %s245_s14 = int_to_ptr.hbm [resolvable:$true] %s244_s14 }
  0x1a   : > { %s230_s13 = sshll.u32 %s3557_s3, 4  ;;  %s218_s7 = sshll.u32 %s3147_s29, 4  ;;  %s231_s13 = int_to_ptr.hbm [resolvable:$true] %s230_s13  ;;  %s219_s7 = int_to_ptr.vmem [resolvable:$true] %s218_s7 }
  0x1b   : > { %2765 = dma.hbm_to_vmem [thread:$0]  (!%p3263_p12), %s231_s13, 2048, %s233_s15, [#allocation11], %s3145_s17, %s3145_s17, %s3146_s18  }
  0x1c   : > { %s3148_s3 = smov 64   ;;  %s3149_s28 = smov 4  }
  0x1d   : > { %2762 = dma.hbm_to_vmem [thread:$0]  (!%p3263_p12), %s217_s21, 4096, %s219_s7, [#allocation8], %s3148_s3, %s3148_s3, %s3149_s28  }
  0x1e   : > { %s3150_s9 = smov [#allocation12]   ;;  %p2144_p13 = scmp.ge.s32.totalorder %s3142_s26, 3 }
  0x1f   : > { %s246_s6 = sshll.u32 %s3150_s9, 4  ;;  %s247_s6 = int_to_ptr.vmem [resolvable:$true] %s246_s6 }
  0x20   : > { %2768 = dma.hbm_to_vmem [thread:$0]  (!%p3263_p12), %s245_s14, 256, %s247_s6, [#allocation11], %s3145_s17, %s3145_s17, %s3146_s18  }
  0x21   : > { %259 = sbr.rel (%p2144_p13) target bundleno = 55 (0x37), region = 32 }
  0x26   : > { %262 = sbr.rel (!%p3233_p3) target bundleno = 48 (0x30), region = 36  ;;  %s263_s13 = sand.u32 (%p3233_p3), 1, %s3130_s23  }
  0x27   : > { %s2145_s15 = sshll.u32 (%p3233_p3), %s263_s13, 3  ;;  %s264_s19 = scalar_lea.sflag (%p3233_p3), [#allocation5], %s263_s13 }
  0x28   : > { %s267_s20 = scalar_lea.vmem (%p3233_p3), [#allocation4], %s2145_s15 }
  0x2b   : > { %273 = vsyncadd %s264_s19, 64  ;;  %s2146_s3 = sshll.u32 %s3138_s25, 2  ;;  %s282_s28 = sshll.u32 %s267_s20, 4  ;;  %s283_s28 = int_to_ptr.vmem [resolvable:$true] %s282_s28 }
  0x2c   : > { %s278_s16 = scalar_lea.hbm %s3542_s0, %s2146_s3  ;;  %s3151_s17 = smov 192  }
  0x2d   : > { %s280_s6 = sshll.u32 %s278_s16, 4  ;;  %s3152_s18 = smov 64   ;;  %s281_s6 = int_to_ptr.hbm [resolvable:$true] %s280_s6 }
  0x2e   : > { %s3153_s29 = smov 4  }
  0x2f   : > { %288 = dma.hbm_to_vmem [thread:$0]  %s281_s6, 64, %s283_s28, %s264_s19, %s3151_s17, %s3152_s18, %s3153_s29  }
  0x30 PF: > { %s292_s7 = sand.u32 1, %s3142_s26   ;;  %s294_s11 = sand.u32 1, %s3130_s23  }
  0x31   : > { %s2147_s12 = sshll.u32 %s294_s11, 6  ;;  %s2626_s14 = sshll.u32 %s3138_s25, 6 }
  0x32   : > { %s301_s20 = scalar_lea.hbm %s3543_s1, %s2626_s14  ;;  %s296_s3 = scalar_lea.vmem [#allocation7], %s2147_s12 }
  0x33   : > { %s304_s21 = sshll.u32 %s296_s3, 4  ;;  %s302_s9 = sshll.u32 %s301_s20, 4  ;;  %s305_s21 = int_to_ptr.vmem [resolvable:$true] %s304_s21  ;;  %s303_s9 = int_to_ptr.hbm [resolvable:$true] %s302_s9 }
  0x34   : > { %s293_s16 = scalar_lea.sflag [#allocation8], %s292_s7  ;;  %s3154_s19 = smov 64  }
  0x35   : > { %s3155_s28 = smov 4  }
  0x36   : > { %2746 = dma.hbm_to_vmem [thread:$0]  (%p3233_p3), %s303_s9, 1024, %s305_s21, %s293_s16, %s3154_s19, %s3154_s19, %s3155_s28  }
  0x37 PF: > { %316 = sbr.rel (%p3252_p10) target bundleno = 3491 (0xda3), region = 44  ;;  %s318_s6 = sand.u32 (!%p3252_p10), 1, %s3126_s22  }
  0x38   : > { %s2151_s17 = sshll.u32 (!%p3252_p10), %s318_s6, 3  ;;  %s319_s18 = scalar_lea.sflag (!%p3252_p10), [#allocation5], %s318_s6 }
  0x39   : > { %s3298_s29 = scalar_lea.vmem (!%p3252_p10), [#allocation4], %s2151_s17 }
  0x3c   : > { %3101 = dma.done.wait (%p3244_p8), %s319_s18, 128  }
  0x3d   : > { %3103 = vsyncadd (%p3244_p8), %s319_s18, 4294967168  ;;  %s328_s30 = sand.u32 1, %s3224_s27   ;;  %s2152_s7 = sshll.u32 %s318_s6, 6 }
  0x3e   : > { %s329_s11 = scalar_lea.sflag [#allocation8], %s328_s30  ;;  %s3305_s12 = scalar_lea.vmem [#allocation7], %s2152_s7 }
  0x3f   : > { %3105 = dma.done.wait (%p3244_p8), %s329_s11, 1024  }
  0x40   : > { %3107 = vsyncadd (%p3244_p8), %s329_s11, 4294966272 }
  0x41   : > { %3109 = dma.done.wait (%p59_p5), [#allocation8], 4096  }
  0x42   : > { %3111 = vsyncadd (%p59_p5), [#allocation8], 4294963200 }
  0x43   : > { %3113 = dma.done.wait (%p59_p5), [#allocation11], 2304  }
  0x44   : > { %3115 = vsyncadd (%p59_p5), [#allocation11], 4294964992  ;;  %p2156_p0 = scmp.ne.s32.totalorder %s3134_s24, 0 }
  0x46   : > { %386 = sbr.rel (%p2156_p0) target bundleno = 80 (0x50), region = 68 }
  0x4b   : > { %v3156_v0 = vmov 0.0  }
  0x4c   : > { %387 = vst [vmem:[#allocation2] sm:$0xff] %v3156_v0 }
  0x4d   : > { %388 = vst [vmem:[#allocation2 + $0x8] sm:$0xff] %v3156_v0 }
  0x4e   : > { %389 = vst [vmem:[#allocation3 + $0x8] sm:$0xff] %v3156_v0 }
  0x4f   : > { %390 = vst [vmem:[#allocation3] sm:$0xff] %v3156_v0 }
  0x50 PF: > { %p2157_p1 = scmp.eq.s32.totalorder %s3134_s24, 2 }
  0x52   : > { %394 = sbr.rel (%p2157_p1) target bundleno = 256 (0x100), region = 72 }
  0x57   : > { %v2635_v1 = vld [vmem:[%s3305_s12 + $0x38] sm:$0xff]  ;;  %v2634_v2 = vld [vmem:[%s3305_s12 + $0x30] sm:$0xff]  ;;  %v2633_v3 = vld [vmem:[%s3305_s12 + $0x28] sm:$0xff] }
  0x58   : > { %469 = vmatpush.bf16.msra.mxu0 %v2635_v1  ;;  %v2632_v4 = vld [vmem:[%s3305_s12 + $0x20] sm:$0xff]  ;;  %v2631_v5 = vld [vmem:[%s3305_s12 + $0x18] sm:$0xff]  ;;  %v2630_v6 = vld [vmem:[%s3305_s12 + $0x10] sm:$0xff] }
  0x59   : > { %v2629_v7 = vld [vmem:[%s3305_s12 + $0x8] sm:$0xff]  ;;  %v2628_v8 = vld [vmem:[%s3305_s12] sm:$0xff]  ;;  %v2627_v9 = vld [vmem:[%s3298_s29] sm:$0xff] }
  0x5a   : > { %v395_v10 = vld [vmem:[%s3298_s29] sm:$0xff]   ;;  %v491_v15 = vld [vmem:[#allocation3 + $0x8] sm:$0xff]  ;;  %v492_v16 = vld [vmem:[#allocation3] sm:$0xff] }
  0x5b   : > { %v487_v11 = vunpack.c.l.bf16 %v395_v10  ;;  %v488_v12 = vunpack.c.h.bf16 %v395_v10  ;;  %v397_v19 = vld [vmem:[#allocation2] sm:$0xff]  ;;  %v398_v22 = vld [vmem:[#allocation2 + $0x8] sm:$0xff] }
  0x5c   : > { %470 = vmatpush.bf16.msra.mxu0 %v2634_v2 }
  0x5d   : > { %v489_v13 = vmul.f32 %v487_v11, %v487_v11  ;;  %v490_v14 = vmul.f32 %v488_v12, %v488_v12 }
  0x5f   : > { %v493_v17 = vadd.f32 %v491_v15, %v489_v13  ;;  %v494_v18 = vadd.f32 %v492_v16, %v490_v14 }
  0x60   : > { %471 = vmatpush.bf16.msra.mxu0 %v2633_v3 }
  0x61   : > { %495 = vst [vmem:[#allocation3 + $0x8] sm:$0xff] %v493_v17 }
  0x62   : > { %496 = vst [vmem:[#allocation3] sm:$0xff] %v494_v18 }
  0x64   : > { %472 = vmatpush.bf16.msra.mxu0 %v2632_v4 }
  0x68   : > { %473 = vmatpush.bf16.msra.mxu0 %v2631_v5 }
  0x6c   : > { %474 = vmatpush.bf16.msra.mxu0 %v2630_v6 }
  0x70   : > { %475 = vmatpush.bf16.msra.mxu0 %v2629_v7 }
  0x74   : > { %476 = vmatpush.bf16.msra.mxu0 %v2628_v8 }
  0x77   : > { %477 = vmatmul.bf16.vlgmr.msra.gmra.mxu0 %v2627_v9 }
  0xf4   : > { %v478_v20 = vpop.f32.mrf.mxu0 }
  0xf5   : > { %v483_v21 = vadd.f32 %v478_v20, %v397_v19 }
  0xf7   : > { %485 = vst [vmem:[#allocation2] sm:$0xff] %v483_v21 }
  0xfc   : > { %v480_v23 = vpop.f32.mrf.mxu0 }
  0xfd   : > { %v484_v24 = vadd.f32 %v480_v23, %v398_v22 }
  0xff   : > { %486 = vst [vmem:[#allocation2 + $0x8] sm:$0xff] %v484_v24 }
 0x100 PF: > { %p2194_p2 = scmp.ne.s32.totalorder %s3134_s24, 2 }
 0x101   : > { %s2195_s8 = sshll.u32 (!%p2194_p2), %s3134_s24, 7 }
 0x102   : > { %500 = sbr.rel (%p2194_p2) target bundleno = 3481 (0xd99), region = 76  ;;  %s506_s10 = ssub.s32 (!%p2194_p2), 300, %s2195_s8 }
 0x107   : > { %v2643_v25 = vld [vmem:[%s3305_s12 + $0x38] sm:$0xff]  ;;  %v503_v26 = vlaneseq  ;;  %v2642_v27 = vld [vmem:[%s3305_s12 + $0x30] sm:$0xff]  ;;  %v507_v29 = vstv %s506_s10  ;;  %v2641_v32 = vld [vmem:[%s3305_s12 + $0x28] sm:$0xff] }
 0x108   : > { %584 = vmatpush.bf16.msra.mxu0 %v2643_v25  ;;  %v501_v30 = vld [vmem:[%s3298_s29] sm:$0xf]  ;;  %v502_v31 = vld [vmem:[%s3298_s29 + $0x4] sm:$0xf]  ;;  %v606_v37 = vld [vmem:[#allocation3 + $0x8] sm:$0xff] }
 0x109   : > { %v504_v28 = vand.u32 127, %v503_v26  ;;  %v607_v40 = vld [vmem:[#allocation3] sm:$0xff]  ;;  %v2639_v44 = vld [vmem:[%s3305_s12 + $0x18] sm:$0xff]  ;;  %v2638_v45 = vld [vmem:[%s3305_s12 + $0x10] sm:$0xff] }
 0x10a   : > { %v2640_v41 = vld [vmem:[%s3305_s12 + $0x20] sm:$0xff]  ;;  %v2637_v46 = vld [vmem:[%s3305_s12 + $0x8] sm:$0xff]  ;;  %v512_v59 = vld [vmem:[#allocation2] sm:$0xff] }
 0x10b   : > { %vm508_vm0 = vcmp.lt.s32.totalorder %v504_v28, %v507_v29  ;;  %v2636_v49 = vld [vmem:[%s3305_s12] sm:$0xff]  ;;  %v513_v3 = vld [vmem:[#allocation2 + $0x8] sm:$0xff]  ;;  %v2650_v25 = vld [vmem:[#allocation9 + $0x30] sm:$0xff] }
 0x10c   : > { %vm509_vm1 = vmpackc.low %vm508_vm0, %vm508_vm0  ;;  %585 = vmatpush.bf16.msra.mxu0 %v2642_v27  ;;  %v3346_v60 = vld [vmem:[#allocation12] sm:$0xff]  ;;  %v2651_v24 = vld [vmem:[#allocation9 + $0x38] sm:$0xff] }
 0x10d   : > { %v510_v33 = vsel %vm509_vm1, %v501_v30, 0  ;;  %v511_v34 = vsel %vm509_vm1, %v502_v31, 0  ;;  %v631_v63 = vperm.slane %v3346_v60, 0  ;;  %746 = vmatpush.bf16.msra.mxu1 %v2651_v24  ;;  %v2649_v26 = vld [vmem:[#allocation9 + $0x28] sm:$0xff]  ;;  %v2648_v27 = vld [vmem:[#allocation9 + $0x20] sm:$0xff]  ;;  %v2647_v28 = vld [vmem:[#allocation9 + $0x18] sm:$0xff] }
 0x10e   : > { %v602_v35 = vunpack.c.l.bf16 %v510_v33  ;;  %v603_v36 = vunpack.c.l.bf16 %v511_v34  ;;  %v532_v47 = vunpack.c.l.b16 %v510_v33  ;;  %v533_v48 = vunpack.c.l.b16 %v511_v34  ;;  %v2646_v29 = vld [vmem:[#allocation9 + $0x10] sm:$0xff]  ;;  %v2645_v30 = vld [vmem:[#allocation9 + $0x8] sm:$0xff]  ;;  %v2644_v31 = vld [vmem:[#allocation9] sm:$0xff] }
 0x110   : > { %v604_v38 = vmul.f32 %v602_v35, %v602_v35  ;;  %v605_v39 = vmul.f32 %v603_v36, %v603_v36  ;;  %586 = vmatpush.bf16.msra.mxu0 %v2641_v32  ;;  %v534_v50 = vpack.c.b16 %v533_v48, %v532_v47 }
 0x111   : > { %747 = vmatpush.bf16.msra.mxu1 %v2650_v25 }
 0x112   : > { %v608_v42 = vadd.f32 %v606_v37, %v604_v38  ;;  %v3339_v43 = vadd.f32 %v607_v40, %v605_v39 }
 0x114   : > { %610 = vst [vmem:[#allocation3 + $0x8] sm:$0xff] %v608_v42  ;;  %616 = vadd.xlane.f32.xlu0 %v608_v42  ;;  %587 = vmatpush.bf16.msra.mxu0 %v2640_v41 }
 0x115   : > { %611 = vst [vmem:[#allocation3] sm:$0xff] %v3339_v43  ;;  %748 = vmatpush.bf16.msra.mxu1 %v2649_v26 }
 0x118   : > { %588 = vmatpush.bf16.msra.mxu0 %v2639_v44 }
 0x119   : > { %749 = vmatpush.bf16.msra.mxu1 %v2648_v27 }
 0x11c   : > { %589 = vmatpush.bf16.msra.mxu0 %v2638_v45  ;;  %v3354_v45 = vld [vmem:[#allocation12 + $0x8] sm:$0x7f] }
 0x11d   : > { %750 = vmatpush.bf16.msra.mxu1 %v2647_v28 }
 0x120   : > { %590 = vmatpush.bf16.msra.mxu0 %v2637_v46  ;;  %v676_v46 = vperm.slane %v3346_v60, 5 }
 0x121   : > { %751 = vmatpush.bf16.msra.mxu1 %v2646_v29 }
 0x124   : > { %591 = vmatpush.bf16.msra.mxu0 %v2636_v49  ;;  %v678_v49 = vperm.slane %v3354_v45, 2 }
 0x125   : > { %752 = vmatpush.bf16.msra.mxu1 %v2645_v30 }
 0x127   : > { %592 = vmatmul.bf16.vlgmr.msra.gmra.mxu0 %v534_v50 }
 0x129   : > { %753 = vmatpush.bf16.msra.mxu1 %v2644_v31 }
 0x187   : > { %v617_v51 = vpop.xlane.xlu0 %616 }
 0x188   : > { %v618_v52 = vmax.f32 %v617_v51, 1e-30 }
 0x18a   : > { %2841 = vrsqrt.f32 %v618_v52  ;;  %vm625_vm2 = vweird.f32 %v618_v52 }
 0x190   : > { %v2842_v53 = vpop.eup %2841 }
 0x191   : > { %v620_v54 = vmul.f32 %v2842_v53, %v618_v52  ;;  %vm626_vm3 = vweird.f32 %v2842_v53 }
 0x192   : > { %vm627_vm4 = vmor %vm625_vm2, %vm626_vm3 }
 0x193   : > { %v621_v55 = vmul.f32 %v2842_v53, %v620_v54 }
 0x195   : > { %v622_v56 = vmul.f32 0.5, %v621_v55 }
 0x197   : > { %v623_v57 = vsub.f32 1.5, %v622_v56 }
 0x199   : > { %v624_v58 = vmul.f32 %v2842_v53, %v623_v57 }
 0x19b   : > { %v628_v0 = vsel %vm627_vm4, %v2842_v53, %v624_v58  ;;  %v697_v53 = vperm.slane %v3346_v60, 1 }
 0x1a4   : > { %v593_v61 = vpop.f32.mrf.mxu0 }
 0x1a5   : > { %v598_v62 = vadd.f32 %v593_v61, %v512_v59 }
 0x1a7   : > { %600 = vst [vmem:[#allocation2] sm:$0xff] %v598_v62  ;;  %v630_v1 = vmul.f32 %v628_v0, %v598_v62 }
 0x1a9   : > { %v632_v2 = vadd.f32 %v631_v63, %v630_v1 }
 0x1ab   : > { %v2228_v4 = vmul.f32 -1.442695, %v632_v2 }
 0x1ac   : > { %v595_v5 = vpop.f32.mrf.mxu0 }
 0x1ad   : > { %v3351_v6 = vadd.f32 %v595_v5, %v513_v3  ;;  %2843 = vpow2.f32 %v2228_v4 }
 0x1af   : > { %601 = vst [vmem:[#allocation2 + $0x8] sm:$0xff] %v3351_v6 }
 0x1b3   : > { %v2844_v7 = vpop.eup %2843 }
 0x1b4   : > { %v636_v8 = vadd.f32 1.0, %v2844_v7 }
 0x1b6   : > { %2845 = vrcp.f32 %v636_v8  ;;  %v648_v12 = vand.u32 2147483648, %v636_v8  ;;  %v646_v14 = vand.u32 2147483647, %v636_v8  ;;  %vm642_vm6 = vweird.f32 %v636_v8 }
 0x1b8   : > { %v649_v16 = vor.u32 1.1754944e-38, %v648_v12  ;;  %vm647_vm8 = vcmp.eq.f32.partialorder %v646_v14, 8.507059e+37 }
 0x1bc   : > { %v2846_v9 = vpop.eup %2845 }
 0x1bd   : > { %v638_v10 = vmul.f32 %v2846_v9, %v636_v8  ;;  %vm643_vm5 = vweird.f32 %v2846_v9 }
 0x1be   : > { %vm644_vm7 = vmor %vm642_vm6, %vm643_vm5 }
 0x1bf   : > { %v639_v11 = vsub.f32 1.0, %v638_v10 }
 0x1c1   : > { %v640_v13 = vmul.f32 %v2846_v9, %v639_v11 }
 0x1c3   : > { %v641_v15 = vadd.f32 %v2846_v9, %v640_v13 }
 0x1c5   : > { %v645_v17 = vsel %vm644_vm7, %v2846_v9, %v641_v15  ;;  %v2659_v15 = vld [vmem:[#allocation9 + $0x78] sm:$0xff] }
 0x1c6   : > { %v650_v18 = vsel %vm647_vm8, %v649_v16, %v645_v17  ;;  %875 = vmatpush.bf16.msra.mxu2 %v2659_v15  ;;  %v2658_v16 = vld [vmem:[#allocation9 + $0x70] sm:$0xff]  ;;  %v2657_v17 = vld [vmem:[#allocation9 + $0x68] sm:$0xff] }
 0x1c7   : > { %v652_v19 = vmul.f32 %v650_v18, %v632_v2  ;;  %v2656_v18 = vld [vmem:[#allocation9 + $0x60] sm:$0xff] }
 0x1c9   : > { %653 = vadd.xlane.f32.xlu0 %v652_v19 }
 0x1ca   : > { %876 = vmatpush.bf16.msra.mxu2 %v2658_v16 }
 0x1ce   : > { %877 = vmatpush.bf16.msra.mxu2 %v2657_v17 }
 0x1d2   : > { %878 = vmatpush.bf16.msra.mxu2 %v2656_v18 }
 0x23c   : > { %v654_v20 = vpop.xlane.xlu0 %653 }
 0x23d   : > { %v655_v21 = vmul.f32 0.03125, %v654_v20  ;;  %v2654_v20 = vld [vmem:[#allocation9 + $0x50] sm:$0xff] }
 0x23f   : > { %v656_v22 = vsub.f32 %v652_v19, %v655_v21  ;;  %v660_v32 = vmul.f32 96.0, %v655_v21  ;;  %v2655_v19 = vld [vmem:[#allocation9 + $0x58] sm:$0xff] }
 0x240   : > { %879 = vmatpush.bf16.msra.mxu2 %v2655_v19 }
 0x241   : > { %v657_v23 = vmul.f32 %v656_v22, %v656_v22  ;;  %v661_v33 = vmul.f32 %v660_v32, %v655_v21  ;;  %v2653_v21 = vld [vmem:[#allocation9 + $0x48] sm:$0xff] }
 0x243   : > { %658 = vadd.xlane.f32.xlu1 %v657_v23 }
 0x244   : > { %880 = vmatpush.bf16.msra.mxu2 %v2654_v20 }
 0x248   : > { %881 = vmatpush.bf16.msra.mxu2 %v2653_v21 }
 0x2b6   : > { %v659_v34 = vpop.xlane.xlu1 %658 }
 0x2b7   : > { %v662_v35 = vsub.f32 %v659_v34, %v661_v33 }
 0x2b9   : > { %v663_v36 = vmul.f32 0.03125, %v662_v35 }
 0x2bb   : > { %v664_v37 = vadd.f32 0.1, %v663_v36 }
 0x2bd   : > { %2847 = vrsqrt.f32 %v664_v37  ;;  %vm671_vm10 = vweird.f32 %v664_v37 }
 0x2c3   : > { %v2848_v38 = vpop.eup %2847 }
 0x2c4   : > { %v666_v39 = vmul.f32 %v2848_v38, %v664_v37  ;;  %vm672_vm9 = vweird.f32 %v2848_v38 }
 0x2c5   : > { %vm673_vm11 = vmor %vm671_vm10, %vm672_vm9 }
 0x2c6   : > { %v667_v40 = vmul.f32 %v2848_v38, %v666_v39 }
 0x2c8   : > { %v668_v41 = vmul.f32 0.5, %v667_v40  ;;  %v803_v40 = vperm.slane %v3346_v60, 6 }
 0x2ca   : > { %v669_v42 = vsub.f32 1.5, %v668_v41 }
 0x2cc   : > { %v670_v44 = vmul.f32 %v2848_v38, %v669_v42 }
 0x2ce   : > { %v674_v47 = vsel %vm673_vm11, %v2848_v38, %v670_v44 }
 0x2cf   : > { %v675_v48 = vmul.f32 %v674_v47, %v656_v22  ;;  %v2652_v22 = vld [vmem:[#allocation9 + $0x40] sm:$0xff]  ;;  %v805_v47 = vperm.slane %v3354_v45, 3 }
 0x2d0   : > { %882 = vmatpush.bf16.msra.mxu2 %v2652_v22 }
 0x2d1   : > { %v677_v50 = vmul.f32 %v676_v46, %v675_v48 }
 0x2d3   : > { %v3362_v51 = vadd.f32 %v678_v49, %v677_v50 }
 0x2d5   : > { %v680_v52 = vpack.c.bf16 %v3362_v51, %v3362_v51 }
 0x2d7   : > { %754 = vmatmul.bf16.vlgmr.msra.gmra.mxu1 %v680_v52 }
 0x354   : > { %v755_v54 = vpop.f32.mrf.mxu1 }
 0x355   : > { %v756_v55 = vadd.f32 %v755_v54, %v697_v53 }
 0x357   : > { %v759_v56 = vadd.f32 %v756_v55, %v3362_v51 }
 0x359   : > { %v2261_v57 = vmul.f32 -1.442695, %v759_v56 }
 0x35b   : > { %2849 = vpow2.f32 %v2261_v57 }
 0x35c   : > { %v757_v58 = vpop.f32.mrf.mxu1 }
 0x361   : > { %v2850_v59 = vpop.eup %2849 }
 0x362   : > { %v763_v61 = vadd.f32 1.0, %v2850_v59 }
 0x364   : > { %2851 = vrcp.f32 %v763_v61  ;;  %v775_v2 = vand.u32 2147483648, %v763_v61  ;;  %v773_v4 = vand.u32 2147483647, %v763_v61  ;;  %vm769_vm13 = vweird.f32 %v763_v61 }
 0x366   : > { %v776_v7 = vor.u32 1.1754944e-38, %v775_v2  ;;  %vm774_vm15 = vcmp.eq.f32.partialorder %v773_v4, 8.507059e+37 }
 0x36a   : > { %v2852_v62 = vpop.eup %2851 }
 0x36b   : > { %v765_v0 = vmul.f32 %v2852_v62, %v763_v61  ;;  %vm770_vm12 = vweird.f32 %v2852_v62 }
 0x36c   : > { %vm771_vm14 = vmor %vm769_vm13, %vm770_vm12 }
 0x36d   : > { %v766_v1 = vsub.f32 1.0, %v765_v0 }
 0x36f   : > { %v767_v3 = vmul.f32 %v2852_v62, %v766_v1 }
 0x371   : > { %v768_v5 = vadd.f32 %v2852_v62, %v767_v3 }
 0x373   : > { %v772_v8 = vsel %vm771_vm14, %v2852_v62, %v768_v5 }
 0x374   : > { %v777_v9 = vsel %vm774_vm15, %v776_v7, %v772_v8 }
 0x375   : > { %v779_v10 = vmul.f32 %v777_v9, %v759_v56  ;;  %v826_v9 = vperm.slane %v3346_v60, 2 }
 0x377   : > { %780 = vadd.xlane.f32.xlu1 %v779_v10 }
 0x3ea   : > { %v781_v11 = vpop.xlane.xlu1 %780 }
 0x3eb   : > { %v782_v12 = vmul.f32 0.03125, %v781_v11 }
 0x3ed   : > { %v783_v13 = vsub.f32 %v779_v10, %v782_v12  ;;  %v787_v23 = vmul.f32 96.0, %v782_v12 }
 0x3ef   : > { %v784_v14 = vmul.f32 %v783_v13, %v783_v13  ;;  %v788_v24 = vmul.f32 %v787_v23, %v782_v12 }
 0x3f1   : > { %785 = vadd.xlane.f32.xlu2 %v784_v14 }
 0x3f9   : > { %1325 = vadd.xlane.f32.xlu2 %v3339_v43 }
 0x464   : > { %v786_v25 = vpop.xlane.xlu2 %785 }
 0x465   : > { %v789_v43 = vsub.f32 %v786_v25, %v788_v24 }
 0x467   : > { %v790_v26 = vmul.f32 0.03125, %v789_v43 }
 0x469   : > { %v791_v27 = vadd.f32 0.1, %v790_v26 }
 0x46b   : > { %2853 = vrsqrt.f32 %v791_v27  ;;  %vm798_vm1 = vweird.f32 %v791_v27 }
 0x46c   : > { %v1326_v28 = vpop.xlane.xlu2 %1325 }
 0x46d   : > { %v1327_v29 = vmax.f32 %v1326_v28, 1e-30 }
 0x46f   : > { %2855 = vrsqrt.f32 %v1327_v29  ;;  %vm1334_vm2 = vweird.f32 %v1327_v29 }
 0x471   : > { %v2854_v30 = vpop.eup %2853 }
 0x472   : > { %v793_v31 = vmul.f32 %v2854_v30, %v791_v27  ;;  %vm799_vm0 = vweird.f32 %v2854_v30 }
 0x473   : > { %vm800_vm4 = vmor %vm798_vm1, %vm799_vm0 }
 0x474   : > { %v794_v32 = vmul.f32 %v2854_v30, %v793_v31 }
 0x475   : > { %v2856_v33 = vpop.eup %2855 }
 0x476   : > { %v795_v34 = vmul.f32 0.5, %v794_v32  ;;  %v1329_v35 = vmul.f32 %v2856_v33, %v1327_v29  ;;  %vm1335_vm3 = vweird.f32 %v2856_v33 }
 0x477   : > { %vm1336_vm5 = vmor %vm1334_vm2, %vm1335_vm3 }
 0x478   : > { %v796_v36 = vsub.f32 1.5, %v795_v34  ;;  %v1330_v37 = vmul.f32 %v2856_v33, %v1329_v35  ;;  %v2666_v35 = vld [vmem:[#allocation9 + $0xb0] sm:$0xff] }
 0x47a   : > { %v797_v38 = vmul.f32 %v2854_v30, %v796_v36  ;;  %v1331_v39 = vmul.f32 0.5, %v1330_v37  ;;  %v2665_v37 = vld [vmem:[#allocation9 + $0xa8] sm:$0xff] }
 0x47c   : > { %v1332_v41 = vsub.f32 1.5, %v1331_v39  ;;  %v801_v42 = vsel %vm800_vm4, %v2854_v30, %v797_v38  ;;  %v2664_v38 = vld [vmem:[#allocation9 + $0xa0] sm:$0xff]  ;;  %v2663_v39 = vld [vmem:[#allocation9 + $0x98] sm:$0xff] }
 0x47d   : > { %v802_v44 = vmul.f32 %v801_v42, %v783_v13  ;;  %v2661_v42 = vld [vmem:[#allocation9 + $0x88] sm:$0xff] }
 0x47e   : > { %v1333_v48 = vmul.f32 %v2856_v33, %v1332_v41  ;;  %v2662_v41 = vld [vmem:[#allocation9 + $0x90] sm:$0xff] }
 0x47f   : > { %v804_v50 = vmul.f32 %v803_v40, %v802_v44  ;;  %v2660_v44 = vld [vmem:[#allocation9 + $0x80] sm:$0xff] }
 0x480   : > { %v1337_v52 = vsel %vm1336_vm5, %v2856_v33, %v1333_v48  ;;  %v2667_v33 = vld [vmem:[#allocation9 + $0xb8] sm:$0xff] }
 0x481   : > { %v806_v54 = vadd.f32 %v805_v47, %v804_v50  ;;  %v1339_v55 = vmul.f32 %v1337_v52, %v3351_v6  ;;  %1004 = vmatpush.bf16.msra.mxu3 %v2667_v33  ;;  %v2699_v48 = vld [vmem:[#allocation9 + $0x38] sm:$0xff]  ;;  %v955_v33 = vperm.slane %v3346_v60, 3 }
 0x483   : > { %v808_v56 = vpack.c.bf16 %v806_v54, %v806_v54  ;;  %v1340_v57 = vadd.f32 %v1339_v55, %v631_v63  ;;  %v3382_v11 = vadd.f32 %v806_v54, %v3362_v51  ;;  %v2698_v54 = vld [vmem:[#allocation9 + $0x30] sm:$0xff] }
 0x485   : > { %883 = vmatmul.bf16.vlgmr.msra.gmra.mxu2 %v808_v56  ;;  %v2425_v58 = vmul.f32 -1.442695, %v1340_v57  ;;  %1005 = vmatpush.bf16.msra.mxu3 %v2666_v35  ;;  %v2697_v56 = vld [vmem:[#allocation9 + $0x28] sm:$0xff] }
 0x487   : > { %2857 = vpow2.f32 %v2425_v58  ;;  %v2696_v58 = vld [vmem:[#allocation9 + $0x20] sm:$0xff] }
 0x489   : > { %1006 = vmatpush.bf16.msra.mxu3 %v2665_v37 }
 0x48d   : > { %v2858_v59 = vpop.eup %2857  ;;  %1007 = vmatpush.bf16.msra.mxu3 %v2664_v38 }
 0x48e   : > { %v1344_v61 = vadd.f32 1.0, %v2858_v59 }
 0x490   : > { %2859 = vrcp.f32 %v1344_v61  ;;  %v1356_v2 = vand.u32 2147483648, %v1344_v61  ;;  %v1354_v4 = vand.u32 2147483647, %v1344_v61  ;;  %vm1350_vm7 = vweird.f32 %v1344_v61 }
 0x491   : > { %1008 = vmatpush.bf16.msra.mxu3 %v2663_v39 }
 0x492   : > { %v1357_v6 = vor.u32 1.1754944e-38, %v1356_v2  ;;  %vm1355_vm9 = vcmp.eq.f32.partialorder %v1354_v4, 8.507059e+37  ;;  %v2695_v2 = vld [vmem:[#allocation9 + $0x18] sm:$0xff]  ;;  %v2694_v4 = vld [vmem:[#allocation9 + $0x10] sm:$0xff] }
 0x495   : > { %1009 = vmatpush.bf16.msra.mxu3 %v2662_v41 }
 0x496   : > { %v2860_v62 = vpop.eup %2859 }
 0x497   : > { %v1346_v0 = vmul.f32 %v2860_v62, %v1344_v61  ;;  %vm1351_vm6 = vweird.f32 %v2860_v62 }
 0x498   : > { %vm1352_vm8 = vmor %vm1350_vm7, %vm1351_vm6 }
 0x499   : > { %v1347_v1 = vsub.f32 1.0, %v1346_v0  ;;  %1010 = vmatpush.bf16.msra.mxu3 %v2661_v42 }
 0x49b   : > { %v1348_v3 = vmul.f32 %v2860_v62, %v1347_v1 }
 0x49d   : > { %v1349_v5 = vadd.f32 %v2860_v62, %v1348_v3  ;;  %1011 = vmatpush.bf16.msra.mxu3 %v2660_v44 }
 0x49f   : > { %v1353_v7 = vsel %vm1352_vm8, %v2860_v62, %v1349_v5 }
 0x4a0   : > { %v1358_v63 = vsel %vm1355_vm9, %v1357_v6, %v1353_v7  ;;  %v2693_v7 = vld [vmem:[#allocation9 + $0x8] sm:$0xff] }
 0x4a1   : > { %v1360_v8 = vmul.f32 %v1358_v63, %v1340_v57  ;;  %1451 = vmatpush.bf16.msrb.mxu3 %v2699_v48 }
 0x4a3   : > { %1361 = vadd.xlane.f32.xlu1 %v1360_v8 }
 0x4a5   : > { %1452 = vmatpush.bf16.msrb.mxu3 %v2698_v54 }
 0x4a9   : > { %1453 = vmatpush.bf16.msrb.mxu3 %v2697_v56 }
 0x4ad   : > { %1454 = vmatpush.bf16.msrb.mxu3 %v2696_v58 }
 0x4b1   : > { %1455 = vmatpush.bf16.msrb.mxu3 %v2695_v2 }
 0x4b5   : > { %1456 = vmatpush.bf16.msrb.mxu3 %v2694_v4 }
 0x4b9   : > { %1457 = vmatpush.bf16.msrb.mxu3 %v2693_v7 }
 0x508   : > { %v884_v10 = vpop.f32.mrf.mxu2 }
 0x509   : > { %v885_v12 = vadd.f32 %v884_v10, %v826_v9 }
 0x50b   : > { %v888_v13 = vadd.f32 %v885_v12, %v3382_v11 }
 0x50d   : > { %v2294_v14 = vmul.f32 -1.442695, %v888_v13 }
 0x50f   : > { %2861 = vpow2.f32 %v2294_v14 }
 0x510   : > { %v886_v15 = vpop.f32.mrf.mxu2 }
 0x515   : > { %v2862_v16 = vpop.eup %2861 }
 0x516   : > { %v892_v17 = vadd.f32 1.0, %v2862_v16  ;;  %v1362_v24 = vpop.xlane.xlu1 %1361 }
 0x517   : > { %v1363_v27 = vmul.f32 0.03125, %v1362_v24 }
 0x518   : > { %2863 = vrcp.f32 %v892_v17  ;;  %v904_v21 = vand.u32 2147483648, %v892_v17  ;;  %v902_v23 = vand.u32 2147483647, %v892_v17  ;;  %vm898_vm11 = vweird.f32 %v892_v17 }
 0x519   : > { %v3387_v29 = vsub.f32 %v1360_v8, %v1363_v27  ;;  %v1368_v50 = vmul.f32 96.0, %v1363_v27  ;;  %v2692_v8 = vld [vmem:[#allocation9] sm:$0xff] }
 0x51a   : > { %v905_v25 = vor.u32 1.1754944e-38, %v904_v21  ;;  %vm903_vm13 = vcmp.eq.f32.partialorder %v902_v23, 8.507059e+37  ;;  %1458 = vmatpush.bf16.msrb.mxu3 %v2692_v8 }
 0x51b   : > { %v1365_v30 = vmul.f32 %v3387_v29, %v3387_v29  ;;  %v1369_v55 = vmul.f32 %v1368_v50, %v1363_v27 }
 0x51e   : > { %v2864_v18 = vpop.eup %2863 }
 0x51f   : > { %v894_v19 = vmul.f32 %v2864_v18, %v892_v17  ;;  %vm899_vm10 = vweird.f32 %v2864_v18 }
 0x520   : > { %vm900_vm12 = vmor %vm898_vm11, %vm899_vm10 }
 0x521   : > { %v895_v20 = vsub.f32 1.0, %v894_v19 }
 0x523   : > { %v896_v22 = vmul.f32 %v2864_v18, %v895_v20  ;;  %v932_v20 = vperm.slane %v3346_v60, 7 }
 0x525   : > { %v897_v51 = vadd.f32 %v2864_v18, %v896_v22 }
 0x527   : > { %v901_v43 = vsel %vm900_vm12, %v2864_v18, %v897_v51  ;;  %v934_v51 = vperm.slane %v3354_v45, 4 }
 0x528   : > { %v906_v26 = vsel %vm903_vm13, %v905_v25, %v901_v43 }
 0x529   : > { %v908_v28 = vmul.f32 %v906_v26, %v888_v13 }
 0x52b   : > { %909 = vadd.xlane.f32.xlu0 %v908_v28 }
 0x533   : > { %1366 = vadd.xlane.f32.xlu0 %v1365_v30 }
 0x59e   : > { %v910_v31 = vpop.xlane.xlu0 %909 }
 0x59f   : > { %v911_v32 = vmul.f32 0.03125, %v910_v31 }
 0x5a1   : > { %v3391_v34 = vsub.f32 %v908_v28, %v911_v32  ;;  %v916_v61 = vmul.f32 96.0, %v911_v32 }
 0x5a3   : > { %v913_v36 = vmul.f32 %v3391_v34, %v3391_v34  ;;  %v917_v0 = vmul.f32 %v916_v61, %v911_v32 }
 0x5a5   : > { %914 = vadd.xlane.f32.xlu2 %v913_v36 }
 0x5a6   : > { %v1367_v52 = vpop.xlane.xlu0 %1366 }
 0x5a7   : > { %v1370_v57 = vsub.f32 %v1367_v52, %v1369_v55 }
 0x5a9   : > { %v1371_v59 = vmul.f32 0.03125, %v1370_v57 }
 0x5ab   : > { %v1372_v62 = vadd.f32 0.1, %v1371_v59 }
 0x5ad   : > { %2865 = vrsqrt.f32 %v1372_v62  ;;  %vm1379_vm2 = vweird.f32 %v1372_v62 }
 0x5b3   : > { %v2866_v63 = vpop.eup %2865 }
 0x5b4   : > { %v1374_v10 = vmul.f32 %v2866_v63, %v1372_v62  ;;  %vm1380_vm1 = vweird.f32 %v2866_v63 }
 0x5b5   : > { %vm1381_vm3 = vmor %vm1379_vm2, %vm1380_vm1 }
 0x5b6   : > { %v1375_v14 = vmul.f32 %v2866_v63, %v1374_v10 }
 0x5b8   : > { %v1376_v17 = vmul.f32 0.5, %v1375_v14  ;;  %v2674_v14 = vld [vmem:[#allocation9 + $0xf0] sm:$0xff] }
 0x5ba   : > { %v1377_v21 = vsub.f32 1.5, %v1376_v17 }
 0x5bc   : > { %v1378_v25 = vmul.f32 %v2866_v63, %v1377_v21 }
 0x5be   : > { %v1382_v27 = vsel %vm1381_vm3, %v2866_v63, %v1378_v25  ;;  %v2672_v25 = vld [vmem:[#allocation9 + $0xe0] sm:$0xff] }
 0x5bf   : > { %v1383_v28 = vmul.f32 %v1382_v27, %v3387_v29  ;;  %v2669_v27 = vld [vmem:[#allocation9 + $0xc8] sm:$0xff] }
 0x5c1   : > { %v1384_v30 = vmul.f32 %v1383_v28, %v676_v46  ;;  %v2668_v28 = vld [vmem:[#allocation9 + $0xc0] sm:$0xff] }
 0x5c3   : > { %v3407_v31 = vadd.f32 %v1384_v30, %v678_v49  ;;  %v2707_v30 = vld [vmem:[#allocation9 + $0x78] sm:$0xff] }
 0x5c5   : > { %v1386_v32 = vpack.c.bf16 %v3407_v31, %v3407_v31 }
 0x618   : > { %v915_v1 = vpop.xlane.xlu2 %914 }
 0x619   : > { %v918_v3 = vsub.f32 %v915_v1, %v917_v0 }
 0x61b   : > { %v919_v5 = vmul.f32 0.03125, %v918_v3 }
 0x61d   : > { %v920_v6 = vadd.f32 0.1, %v919_v5 }
 0x61f   : > { %2867 = vrsqrt.f32 %v920_v6  ;;  %vm927_vm15 = vweird.f32 %v920_v6 }
 0x625   : > { %v2868_v12 = vpop.eup %2867 }
 0x626   : > { %v922_v13 = vmul.f32 %v2868_v12, %v920_v6  ;;  %vm928_vm14 = vweird.f32 %v2868_v12 }
 0x627   : > { %vm929_vm0 = vmor %vm927_vm15, %vm928_vm14 }
 0x628   : > { %v923_v15 = vmul.f32 %v2868_v12, %v922_v13  ;;  %v2675_v13 = vld [vmem:[#allocation9 + $0xf8] sm:$0xff] }
 0x629   : > { %1133 = vmatpush.bf16.msrb.mxu0 %v2675_v13 }
 0x62a   : > { %v924_v16 = vmul.f32 0.5, %v923_v15  ;;  %v2673_v15 = vld [vmem:[#allocation9 + $0xe8] sm:$0xff] }
 0x62c   : > { %v925_v18 = vsub.f32 1.5, %v924_v16 }
 0x62d   : > { %1134 = vmatpush.bf16.msrb.mxu0 %v2674_v14 }
 0x62e   : > { %v926_v19 = vmul.f32 %v2868_v12, %v925_v18 }
 0x630   : > { %v930_v22 = vsel %vm929_vm0, %v2868_v12, %v926_v19 }
 0x631   : > { %v931_v23 = vmul.f32 %v930_v22, %v3391_v34  ;;  %1135 = vmatpush.bf16.msrb.mxu0 %v2673_v15 }
 0x633   : > { %v933_v24 = vmul.f32 %v932_v20, %v931_v23 }
 0x635   : > { %v935_v43 = vadd.f32 %v934_v51, %v933_v24  ;;  %1136 = vmatpush.bf16.msrb.mxu0 %v2672_v25 }
 0x637   : > { %v937_v26 = vpack.c.bf16 %v935_v43, %v935_v43  ;;  %v3413_v35 = vadd.f32 %v935_v43, %v3382_v11  ;;  %v2671_v43 = vld [vmem:[#allocation9 + $0xd8] sm:$0xff] }
 0x639   : > { %1012 = vmatmul.bf16.vlgmr.msra.gmra.mxu3 %v937_v26  ;;  %1137 = vmatpush.bf16.msrb.mxu0 %v2671_v43  ;;  %v2670_v26 = vld [vmem:[#allocation9 + $0xd0] sm:$0xff] }
 0x63d   : > { %1138 = vmatpush.bf16.msrb.mxu0 %v2670_v26 }
 0x641   : > { %1139 = vmatpush.bf16.msrb.mxu0 %v2669_v27 }
 0x645   : > { %1140 = vmatpush.bf16.msrb.mxu0 %v2668_v28 }
 0x649   : > { %1459 = vmatmul.bf16.vlgmr.msrb.gmra.mxu3 %v1386_v32  ;;  %1576 = vmatpush.bf16.msra.mxu0 %v2707_v30  ;;  %v2706_v32 = vld [vmem:[#allocation9 + $0x70] sm:$0xff] }
 0x64d   : > { %1577 = vmatpush.bf16.msra.mxu0 %v2706_v32 }
 0x6bc   : > { %v1013_v34 = vpop.f32.mrf.mxu3 }
 0x6bd   : > { %v1014_v29 = vadd.f32 %v1013_v34, %v955_v33  ;;  %v2705_v34 = vld [vmem:[#allocation9 + $0x68] sm:$0xff] }
 0x6be   : > { %1578 = vmatpush.bf16.msra.mxu0 %v2705_v34 }
 0x6bf   : > { %v1017_v36 = vadd.f32 %v1014_v29, %v3413_v35 }
 0x6c1   : > { %v2327_v46 = vmul.f32 -1.442695, %v1017_v36 }
 0x6c3   : > { %2869 = vpow2.f32 %v2327_v46 }
 0x6c4   : > { %v1015_v37 = vpop.f32.mrf.mxu3 }
 0x6c9   : > { %v2870_v49 = vpop.eup %2869 }
 0x6ca   : > { %v1021_v38 = vadd.f32 1.0, %v2870_v49 }
 0x6cc   : > { %2871 = vrcp.f32 %v1021_v38  ;;  %v1460_v39 = vpop.f32.mrf.mxu3  ;;  %v1033_v54 = vand.u32 2147483648, %v1021_v38  ;;  %v1031_v56 = vand.u32 2147483647, %v1021_v38  ;;  %vm1027_vm5 = vweird.f32 %v1021_v38 }
 0x6cd   : > { %v1461_v41 = vadd.f32 %v1460_v39, %v697_v53 }
 0x6ce   : > { %v1034_v61 = vor.u32 1.1754944e-38, %v1033_v54  ;;  %vm1032_vm7 = vcmp.eq.f32.partialorder %v1031_v56, 8.507059e+37 }
 0x6cf   : > { %v1464_v42 = vadd.f32 %v1461_v41, %v3407_v31 }
 0x6d1   : > { %v2458_v44 = vmul.f32 -1.442695, %v1464_v42 }
 0x6d2   : > { %v2872_v11 = vpop.eup %2871 }
 0x6d3   : > { %2873 = vpow2.f32 %v2458_v44  ;;  %v1023_v48 = vmul.f32 %v2872_v11, %v1021_v38  ;;  %vm1028_vm4 = vweird.f32 %v2872_v11  ;;  %v2703_v38 = vld [vmem:[#allocation9 + $0x58] sm:$0xff]  ;;  %v2701_v44 = vld [vmem:[#allocation9 + $0x48] sm:$0xff] }
 0x6d4   : > { %v1462_v50 = vpop.f32.mrf.mxu3  ;;  %vm1029_vm6 = vmor %vm1027_vm5, %vm1028_vm4 }
 0x6d5   : > { %v1024_v52 = vsub.f32 1.0, %v1023_v48  ;;  %v2700_v48 = vld [vmem:[#allocation9 + $0x40] sm:$0xff] }
 0x6d7   : > { %v1025_v55 = vmul.f32 %v2872_v11, %v1024_v52 }
 0x6d9   : > { %v2874_v57 = vpop.eup %2873  ;;  %v1026_v58 = vadd.f32 %v2872_v11, %v1025_v55 }
 0x6da   : > { %v1468_v59 = vadd.f32 1.0, %v2874_v57 }
 0x6db   : > { %v1030_v62 = vsel %vm1029_vm6, %v2872_v11, %v1026_v58 }
 0x6dc   : > { %2875 = vrcp.f32 %v1468_v59  ;;  %v1035_v53 = vsel %vm1032_vm7, %v1034_v61, %v1030_v62  ;;  %v1480_v4 = vand.u32 2147483648, %v1468_v59  ;;  %v1478_v6 = vand.u32 2147483647, %v1468_v59 }
 0x6dd   : > { %v1037_v0 = vmul.f32 %v1035_v53, %v1017_v36  ;;  %vm1474_vm9 = vweird.f32 %v1468_v59  ;;  %v2704_v36 = vld [vmem:[#allocation9 + $0x60] sm:$0xff] }
 0x6de   : > { %v1481_v63 = vor.u32 1.1754944e-38, %v1480_v4  ;;  %vm1479_vm11 = vcmp.eq.f32.partialorder %v1478_v6, 8.507059e+37  ;;  %1579 = vmatpush.bf16.msra.mxu0 %v2704_v36 }
 0x6df   : > { %1038 = vadd.xlane.f32.xlu1 %v1037_v0 }
 0x6e2   : > { %v2876_v1 = vpop.eup %2875  ;;  %1580 = vmatpush.bf16.msra.mxu0 %v2703_v38 }
 0x6e3   : > { %v1470_v2 = vmul.f32 %v2876_v1, %v1468_v59  ;;  %vm1475_vm8 = vweird.f32 %v2876_v1 }
 0x6e4   : > { %vm1476_vm10 = vmor %vm1474_vm9, %vm1475_vm8 }
 0x6e5   : > { %v1471_v3 = vsub.f32 1.0, %v1470_v2 }
 0x6e7   : > { %v1472_v5 = vmul.f32 %v2876_v1, %v1471_v3  ;;  %v1063_v3 = vperm.slane %v3354_v45, 5 }
 0x6e9   : > { %v1473_v7 = vadd.f32 %v2876_v1, %v1472_v5 }
 0x6eb   : > { %v1477_v8 = vsel %vm1476_vm10, %v2876_v1, %v1473_v7 }
 0x6ec   : > { %v1482_v10 = vsel %vm1479_vm11, %v1481_v63, %v1477_v8 }
 0x6ed   : > { %v1484_v12 = vmul.f32 %v1482_v10, %v1464_v42  ;;  %v2702_v42 = vld [vmem:[#allocation9 + $0x50] sm:$0xff] }
 0x6ee   : > { %1581 = vmatpush.bf16.msra.mxu0 %v2702_v42 }
 0x6ef   : > { %1485 = vadd.xlane.f32.xlu2 %v1484_v12 }
 0x6f2   : > { %1582 = vmatpush.bf16.msra.mxu0 %v2701_v44 }
 0x6f6   : > { %1583 = vmatpush.bf16.msra.mxu0 %v2700_v48 }
 0x752   : > { %v1039_v16 = vpop.xlane.xlu1 %1038 }
 0x753   : > { %v1040_v17 = vmul.f32 0.03125, %v1039_v16 }
 0x755   : > { %v1041_v18 = vsub.f32 %v1037_v0, %v1040_v17  ;;  %v1045_v29 = vmul.f32 96.0, %v1040_v17  ;;  %v1061_v0 = vperm.slane %v3354_v45, 0 }
 0x757   : > { %v1042_v19 = vmul.f32 %v1041_v18, %v1041_v18  ;;  %v1046_v46 = vmul.f32 %v1045_v29, %v1040_v17 }
 0x759   : > { %1043 = vadd.xlane.f32.xlu0 %v1042_v19  ;;  %v1084_v19 = vperm.slane %v3346_v60, 4 }
 0x762   : > { %v1486_v21 = vpop.xlane.xlu2 %1485 }
 0x763   : > { %v1487_v22 = vmul.f32 0.03125, %v1486_v21 }
 0x765   : > { %v3421_v23 = vsub.f32 %v1484_v12, %v1487_v22  ;;  %v1492_v11 = vmul.f32 96.0, %v1487_v22 }
 0x767   : > { %v1489_v24 = vmul.f32 %v3421_v23, %v3421_v23  ;;  %v1493_v54 = vmul.f32 %v1492_v11, %v1487_v22 }
 0x769   : > { %1490 = vadd.xlane.f32.xlu1 %v1489_v24 }
 0x7cc   : > { %v1044_v37 = vpop.xlane.xlu0 %1043 }
 0x7cd   : > { %v1047_v49 = vsub.f32 %v1044_v37, %v1046_v46 }
 0x7cf   : > { %v1048_v39 = vmul.f32 0.03125, %v1047_v49 }
 0x7d1   : > { %v1049_v41 = vadd.f32 0.1, %v1048_v39 }
 0x7d3   : > { %2877 = vrsqrt.f32 %v1049_v41  ;;  %vm1056_vm13 = vweird.f32 %v1049_v41 }
 0x7d9   : > { %v2878_v50 = vpop.eup %2877 }
 0x7da   : > { %v1051_v52 = vmul.f32 %v2878_v50, %v1049_v41  ;;  %vm1057_vm12 = vweird.f32 %v2878_v50 }
 0x7db   : > { %vm1058_vm14 = vmor %vm1056_vm13, %vm1057_vm12 }
 0x7dc   : > { %v1052_v55 = vmul.f32 %v2878_v50, %v1051_v52  ;;  %v1491_v56 = vpop.xlane.xlu1 %1490 }
 0x7dd   : > { %v1494_v57 = vsub.f32 %v1491_v56, %v1493_v54 }
 0x7de   : > { %v1053_v58 = vmul.f32 0.5, %v1052_v55 }
 0x7df   : > { %v1495_v59 = vmul.f32 0.03125, %v1494_v57 }
 0x7e0   : > { %v1054_v61 = vsub.f32 1.5, %v1053_v58 }
 0x7e1   : > { %v1496_v62 = vadd.f32 0.1, %v1495_v59 }
 0x7e2   : > { %v1055_v53 = vmul.f32 %v2878_v50, %v1054_v61 }
 0x7e3   : > { %2879 = vrsqrt.f32 %v1496_v62  ;;  %vm1503_vm0 = vweird.f32 %v1496_v62 }
 0x7e4   : > { %v1059_v1 = vsel %vm1058_vm14, %v2878_v50, %v1055_v53  ;;  %v2691_v53 = vld [vmem:[#allocation10 + $0x74] sm:$0xf0] }
 0x7e5   : > { %v1060_v2 = vmul.f32 %v1059_v1, %v1041_v18  ;;  %v2411_v1 = vld [vmem:[#allocation10 + $0x60] sm:$0xf] }
 0x7e7   : > { %v1062_v4 = vmul.f32 %v1061_v0, %v1060_v2 }
 0x7e9   : > { %v2880_v5 = vpop.eup %2879  ;;  %v1064_v6 = vadd.f32 %v1063_v3, %v1062_v4  ;;  %v2689_v4 = vld [vmem:[#allocation10 + $0x64] sm:$0xf0] }
 0x7ea   : > { %v1498_v7 = vmul.f32 %v2880_v5, %v1496_v62  ;;  %vm1504_vm15 = vweird.f32 %v2880_v5  ;;  %v2419_v62 = vld [vmem:[#allocation10 + $0x70] sm:$0xf] }
 0x7eb   : > { %v1066_v63 = vpack.c.bf16 %v1064_v6, %v1064_v6  ;;  %vm1505_vm1 = vmor %vm1503_vm0, %vm1504_vm15  ;;  %v1065_v22 = vadd.f32 %v1064_v6, %v3413_v35  ;;  %v2420_v2 = vor.u32 %v2691_v53, %v2419_v62  ;;  %v2403_v6 = vld [vmem:[#allocation10 + $0x50] sm:$0xf]  ;;  %v2713_v62 = vld [vmem:[#allocation9 + $0xa8] sm:$0xff] }
 0x7ec   : > { %v1499_v8 = vmul.f32 %v2880_v5, %v1498_v7  ;;  %v2687_v7 = vld [vmem:[#allocation10 + $0x54] sm:$0xf0] }
 0x7ed   : > { %1141 = vmatmul.bf16.vlgmr.msrb.gmra.mxu0 %v1066_v63  ;;  %1296 = vmatpush.bf16.msrb.mxu1 %v2420_v2  ;;  %v2404_v63 = vor.u32 %v2687_v7, %v2403_v6  ;;  %v2365_v2 = vld [vmem:[#allocation10 + $0x8] sm:$0xf0] }
 0x7ee   : > { %v1500_v10 = vmul.f32 0.5, %v1499_v8 }
 0x7f0   : > { %v1501_v12 = vsub.f32 1.5, %v1500_v10 }
 0x7f2   : > { %v1502_v13 = vmul.f32 %v2880_v5, %v1501_v12 }
 0x7f4   : > { %v1506_v14 = vsel %vm1505_vm1, %v2880_v5, %v1502_v13  ;;  %v2412_v5 = vor.u32 %v2689_v4, %v2411_v1  ;;  %v2676_v1 = vld [vmem:[#allocation10 + $0x4] sm:$0xf] }
 0x7f5   : > { %v1507_v15 = vmul.f32 %v1506_v14, %v3421_v23  ;;  %v2368_v4 = vor.u32 %v2676_v1, %v2365_v2 }
 0x7f6   : > { %1297 = vmatpush.bf16.msrb.mxu1 %v2412_v5  ;;  %v2712_v5 = vld [vmem:[#allocation9 + $0xa0] sm:$0xff] }
 0x7f7   : > { %v1508_v16 = vmul.f32 %v1507_v15, %v803_v40 }
 0x7f9   : > { %v1509_v17 = vadd.f32 %v1508_v16, %v805_v47 }
 0x7fa   : > { %1298 = vmatpush.bf16.msrb.mxu1 %v2404_v63 }
 0x7fb   : > { %v1511_v18 = vpack.c.bf16 %v1509_v17, %v1509_v17  ;;  %v3441_v47 = vadd.f32 %v1509_v17, %v3407_v31 }
 0x7fd   : > { %1584 = vmatmul.bf16.vlgmr.msra.gmra.mxu0 %v1511_v18  ;;  %v2395_v18 = vld [vmem:[#allocation10 + $0x40] sm:$0xf] }
 0x86a   : > { %v1142_v21 = vpop.f32.mrf.mxu0 }
 0x86b   : > { %v1143_v24 = vadd.f32 %v1142_v21, %v1084_v19  ;;  %v2685_v21 = vld [vmem:[#allocation10 + $0x44] sm:$0xf0] }
 0x86d   : > { %v1146_v25 = vadd.f32 %v1143_v24, %v1065_v22  ;;  %v2396_v22 = vor.u32 %v2685_v21, %v2395_v18  ;;  %v2690_v24 = vld [vmem:[#allocation10 + $0x74] sm:$0xf]  ;;  %v2709_v18 = vld [vmem:[#allocation9 + $0x88] sm:$0xff] }
 0x86f   : > { %v2360_v43 = vmul.f32 -1.442695, %v1146_v25  ;;  %1299 = vmatpush.bf16.msrb.mxu1 %v2396_v22  ;;  %v2708_v22 = vld [vmem:[#allocation9 + $0x80] sm:$0xff] }
 0x871   : > { %2881 = vpow2.f32 %v2360_v43 }
 0x872   : > { %v1144_v23 = vpop.f32.mrf.mxu0 }
 0x873   : > { %v2387_v23 = vld [vmem:[#allocation10 + $0x30] sm:$0xf] }
 0x877   : > { %v2882_v26 = vpop.eup %2881 }
 0x878   : > { %v1150_v27 = vadd.f32 1.0, %v2882_v26  ;;  %v2683_v26 = vld [vmem:[#allocation10 + $0x34] sm:$0xf0] }
 0x87a   : > { %2883 = vrcp.f32 %v1150_v27  ;;  %v1585_v40 = vpop.f32.mrf.mxu0  ;;  %v1162_v46 = vand.u32 2147483648, %v1150_v27  ;;  %v1160_v49 = vand.u32 2147483647, %v1150_v27  ;;  %vm1156_vm3 = vweird.f32 %v1150_v27 }
 0x87b   : > { %v1586_v28 = vadd.f32 %v1585_v40, %v826_v9  ;;  %v2688_v40 = vld [vmem:[#allocation10 + $0x64] sm:$0xf] }
 0x87c   : > { %v1163_v41 = vor.u32 1.1754944e-38, %v1162_v46  ;;  %vm1161_vm5 = vcmp.eq.f32.partialorder %v1160_v49, 8.507059e+37  ;;  %v2679_v49 = vld [vmem:[#allocation10 + $0x14] sm:$0xf0] }
 0x87d   : > { %v1589_v30 = vadd.f32 %v1586_v28, %v3441_v47  ;;  %v2413_v28 = vld [vmem:[#allocation10 + $0x68] sm:$0xf0] }
 0x87f   : > { %v2491_v35 = vmul.f32 -1.442695, %v1589_v30 }
 0x880   : > { %v2884_v32 = vpop.eup %2883 }
 0x881   : > { %2885 = vpow2.f32 %v2491_v35  ;;  %v1152_v34 = vmul.f32 %v2884_v32, %v1150_v27  ;;  %vm1157_vm2 = vweird.f32 %v2884_v32  ;;  %v2388_v27 = vor.u32 %v2683_v26, %v2387_v23  ;;  %v2379_v35 = vld [vmem:[#allocation10 + $0x20] sm:$0xf] }
 0x882   : > { %v1587_v29 = vpop.f32.mrf.mxu0  ;;  %vm1158_vm4 = vmor %vm1156_vm3, %vm1157_vm2 }
 0x883   : > { %v1153_v36 = vsub.f32 1.0, %v1152_v34  ;;  %1300 = vmatpush.bf16.msrb.mxu1 %v2388_v27  ;;  %v2686_v29 = vld [vmem:[#allocation10 + $0x54] sm:$0xf] }
 0x885   : > { %v1154_v37 = vmul.f32 %v2884_v32, %v1153_v36  ;;  %v2405_v36 = vld [vmem:[#allocation10 + $0x58] sm:$0xf0] }
 0x886   : > { %v2408_v46 = vor.u32 %v2686_v29, %v2405_v36 }
 0x887   : > { %v2886_v38 = vpop.eup %2885  ;;  %v1155_v39 = vadd.f32 %v2884_v32, %v1154_v37  ;;  %v2371_v37 = vld [vmem:[#allocation10 + $0x10] sm:$0xf] }
 0x888   : > { %v1593_v31 = vadd.f32 1.0, %v2886_v38  ;;  %v2372_v38 = vor.u32 %v2679_v49, %v2371_v37 }
 0x889   : > { %v1159_v42 = vsel %vm1158_vm4, %v2884_v32, %v1155_v39  ;;  %v2681_v32 = vld [vmem:[#allocation10 + $0x24] sm:$0xf0]  ;;  %v2684_v39 = vld [vmem:[#allocation10 + $0x44] sm:$0xf] }
 0x88a   : > { %2887 = vrcp.f32 %v1593_v31  ;;  %v1164_v9 = vsel %vm1161_vm5, %v1163_v41, %v1159_v42  ;;  %v1605_v52 = vand.u32 2147483648, %v1593_v31  ;;  %v1603_v55 = vand.u32 2147483647, %v1593_v31  ;;  %v2363_v42 = vld [vmem:[#allocation10] sm:$0xf] }
 0x88b   : > { %v1166_v44 = vmul.f32 %v1164_v9, %v1146_v25  ;;  %vm1599_vm7 = vweird.f32 %v1593_v31  ;;  %v2421_v25 = vld [vmem:[#allocation10 + $0x78] sm:$0xf0]  ;;  %v2380_v34 = vor.u32 %v2681_v32, %v2379_v35  ;;  %v2677_v9 = vld [vmem:[#allocation10 + $0x4] sm:$0xf0] }
 0x88c   : > { %v1606_v57 = vor.u32 1.1754944e-38, %v1605_v52  ;;  %vm1604_vm9 = vcmp.eq.f32.partialorder %v1603_v55, 8.507059e+37  ;;  %v2424_v43 = vor.u32 %v2690_v24, %v2421_v25  ;;  %v2715_v52 = vld [vmem:[#allocation9 + $0xb8] sm:$0xff]  ;;  %v2381_v55 = vld [vmem:[#allocation10 + $0x28] sm:$0xf0] }
 0x88d   : > { %1167 = vadd.xlane.f32.xlu2 %v1166_v44  ;;  %1301 = vmatpush.bf16.msrb.mxu1 %v2380_v34  ;;  %v3464_v32 = vld [vmem:[#allocation12 + $0x8] sm:$0x7f] }
 0x88e   : > { %1309 = vmatpush.bf16.msrb.mxu2 %v2424_v43  ;;  %v1190_v34 = vperm.slane %v3464_v32, 1  ;;  %v1192_v36 = vperm.slane %v3464_v32, 6 }
 0x890   : > { %v2888_v11 = vpop.eup %2887 }
 0x891   : > { %v1595_v48 = vmul.f32 %v2888_v11, %v1593_v31  ;;  %vm1600_vm6 = vweird.f32 %v2888_v11  ;;  %v2397_v31 = vld [vmem:[#allocation10 + $0x48] sm:$0xf0]  ;;  %1302 = vmatpush.bf16.msrb.mxu1 %v2372_v38 }
 0x892   : > { %vm1601_vm8 = vmor %vm1599_vm7, %vm1600_vm6  ;;  %v2400_v41 = vor.u32 %v2684_v39, %v2397_v31 }
 0x893   : > { %v1596_v50 = vsub.f32 1.0, %v1595_v48  ;;  %v2389_v48 = vld [vmem:[#allocation10 + $0x38] sm:$0xf0] }
 0x895   : > { %v1597_v54 = vmul.f32 %v2888_v11, %v1596_v50 }
 0x897   : > { %v1598_v56 = vadd.f32 %v2888_v11, %v1597_v54  ;;  %v2680_v54 = vld [vmem:[#allocation10 + $0x24] sm:$0xf] }
 0x899   : > { %v1602_v58 = vsel %vm1601_vm8, %v2888_v11, %v1598_v56  ;;  %v2682_v11 = vld [vmem:[#allocation10 + $0x34] sm:$0xf]  ;;  %v2384_v56 = vor.u32 %v2680_v54, %v2381_v55 }
 0x89a   : > { %v1607_v59 = vsel %vm1604_vm9, %v1606_v57, %v1602_v58  ;;  %v2392_v50 = vor.u32 %v2682_v11, %v2389_v48  ;;  %v2714_v57 = vld [vmem:[#allocation9 + $0xb0] sm:$0xff] }
 0x89b   : > { %v1609_v61 = vmul.f32 %v1607_v59, %v1589_v30  ;;  %v2416_v30 = vor.u32 %v2688_v40, %v2413_v28  ;;  %v2678_v58 = vld [vmem:[#allocation10 + $0x14] sm:$0xf]  ;;  %v2373_v59 = vld [vmem:[#allocation10 + $0x18] sm:$0xf0] }
 0x89d   : > { %1610 = vadd.xlane.f32.xlu0 %v1609_v61  ;;  %1310 = vmatpush.bf16.msrb.mxu2 %v2416_v30 }
 0x8a1   : > { %1311 = vmatpush.bf16.msrb.mxu2 %v2408_v46 }
 0x8a5   : > { %1312 = vmatpush.bf16.msrb.mxu2 %v2400_v41 }
 0x8a9   : > { %1313 = vmatpush.bf16.msrb.mxu2 %v2392_v50 }
 0x8ad   : > { %1314 = vmatpush.bf16.msrb.mxu2 %v2384_v56 }
 0x900   : > { %v1168_v8 = vpop.xlane.xlu2 %1167 }
 0x901   : > { %v3446_v10 = vmul.f32 0.03125, %v1168_v8  ;;  %v2711_v8 = vld [vmem:[#allocation9 + $0x98] sm:$0xff] }
 0x903   : > { %v3449_v12 = vsub.f32 %v1166_v44, %v3446_v10  ;;  %v2364_v44 = vor.u32 %v2677_v9, %v2363_v42  ;;  %v1174_v53 = vmul.f32 96.0, %v3446_v10 }
 0x905   : > { %v1171_v13 = vmul.f32 %v3449_v12, %v3449_v12  ;;  %1303 = vmatpush.bf16.msrb.mxu1 %v2364_v44  ;;  %v1175_v6 = vmul.f32 %v1174_v53, %v3446_v10 }
 0x907   : > { %1172 = vadd.xlane.f32.xlu1 %v1171_v13 }
 0x909   : > { %1701 = vmatpush.bf16.msra.mxu1 %v2715_v52  ;;  %v3481_v52 = vld [vmem:[%s3547_s5] sm:$0x3] }
 0x90a   : > { %v1212_v54 = vperm.slane %v3481_v52, 0 }
 0x90d   : > { %1702 = vmatpush.bf16.msra.mxu1 %v2714_v57 }
 0x910   : > { %v1611_v14 = vpop.xlane.xlu0 %1610 }
 0x911   : > { %v3453_v15 = vmul.f32 0.03125, %v1611_v14  ;;  %1703 = vmatpush.bf16.msra.mxu1 %v2713_v62 }
 0x913   : > { %v3456_v16 = vsub.f32 %v1609_v61, %v3453_v15  ;;  %v2376_v61 = vor.u32 %v2678_v58, %v2373_v59  ;;  %v1617_v21 = vmul.f32 96.0, %v3453_v15 }
 0x915   : > { %v1614_v17 = vmul.f32 %v3456_v16, %v3456_v16  ;;  %1315 = vmatpush.bf16.msrb.mxu2 %v2376_v61  ;;  %1704 = vmatpush.bf16.msra.mxu1 %v2712_v5  ;;  %v1618_v10 = vmul.f32 %v1617_v21, %v3453_v15 }
 0x917   : > { %1615 = vadd.xlane.f32.xlu2 %v1614_v17  ;;  %v2710_v17 = vld [vmem:[#allocation9 + $0x90] sm:$0xff] }
 0x919   : > { %1316 = vmatpush.bf16.msrb.mxu2 %v2368_v4  ;;  %1705 = vmatpush.bf16.msra.mxu1 %v2711_v8 }
 0x91d   : > { %1706 = vmatpush.bf16.msra.mxu1 %v2710_v17 }
 0x921   : > { %1707 = vmatpush.bf16.msra.mxu1 %v2709_v18 }
 0x925   : > { %1708 = vmatpush.bf16.msra.mxu1 %v2708_v22 }
 0x97a   : > { %v1173_v7 = vpop.xlane.xlu1 %1172 }
 0x97b   : > { %v1176_v63 = vsub.f32 %v1173_v7, %v1175_v6 }
 0x97d   : > { %v1177_v13 = vmul.f32 0.03125, %v1176_v63 }
 0x97f   : > { %v1178_v14 = vadd.f32 0.1, %v1177_v13 }
 0x981   : > { %2889 = vrsqrt.f32 %v1178_v14  ;;  %vm1185_vm11 = vweird.f32 %v1178_v14 }
 0x987   : > { %v2890_v24 = vpop.eup %2889 }
 0x988   : > { %v1180_v25 = vmul.f32 %v2890_v24, %v1178_v14  ;;  %vm1186_vm10 = vweird.f32 %v2890_v24 }
 0x989   : > { %vm1187_vm12 = vmor %vm1185_vm11, %vm1186_vm10 }
 0x98a   : > { %v1181_v43 = vmul.f32 %v2890_v24, %v1180_v25  ;;  %v1616_v23 = vpop.xlane.xlu2 %1615 }
 0x98b   : > { %v1619_v26 = vsub.f32 %v1616_v23, %v1618_v10  ;;  %v2722_v23 = vld [vmem:[#allocation9 + $0xf0] sm:$0xff] }
 0x98c   : > { %v1182_v27 = vmul.f32 0.5, %v1181_v43  ;;  %v2723_v43 = vld [vmem:[#allocation9 + $0xf8] sm:$0xff] }
 0x98d   : > { %v1620_v40 = vmul.f32 0.03125, %v1619_v26  ;;  %1826 = vmatpush.bf16.msra.mxu2 %v2723_v43  ;;  %v2721_v26 = vld [vmem:[#allocation9 + $0xe8] sm:$0xff] }
 0x98e   : > { %v1183_v28 = vsub.f32 1.5, %v1182_v27  ;;  %v2720_v27 = vld [vmem:[#allocation9 + $0xe0] sm:$0xff]  ;;  %v2610_v43 = vld [vmem:[#allocation10 + $0x68] sm:$0xf0] }
 0x98f   : > { %v1621_v30 = vadd.f32 0.1, %v1620_v40  ;;  %v2719_v40 = vld [vmem:[#allocation9 + $0xd8] sm:$0xff] }
 0x990   : > { %v1184_v35 = vmul.f32 %v2890_v24, %v1183_v28  ;;  %v2718_v28 = vld [vmem:[#allocation9 + $0xd0] sm:$0xff] }
 0x991   : > { %2891 = vrsqrt.f32 %v1621_v30  ;;  %vm1628_vm14 = vweird.f32 %v1621_v30  ;;  %1827 = vmatpush.bf16.msra.mxu2 %v2722_v23 }
 0x992   : > { %v1188_v29 = vsel %vm1187_vm12, %v2890_v24, %v1184_v35 }
 0x993   : > { %v1189_v15 = vmul.f32 %v1188_v29, %v3449_v12  ;;  %v2716_v29 = vld [vmem:[#allocation9 + $0xc0] sm:$0xff] }
 0x995   : > { %v1191_v46 = vmul.f32 %v1190_v34, %v1189_v15  ;;  %1828 = vmatpush.bf16.msra.mxu2 %v2721_v26  ;;  %v2600_v26 = vld [vmem:[#allocation10 + $0x50] sm:$0xf] }
 0x997   : > { %v2892_v37 = vpop.eup %2891  ;;  %v1193_v49 = vadd.f32 %v1192_v36, %v1191_v46 }
 0x998   : > { %v1623_v38 = vmul.f32 %v2892_v37, %v1621_v30  ;;  %vm1629_vm13 = vweird.f32 %v2892_v37  ;;  %v2717_v30 = vld [vmem:[#allocation9 + $0xc8] sm:$0xff] }
 0x999   : > { %v1194_v39 = vpack.c.bf16 %v1193_v49, %v1193_v49  ;;  %vm1630_vm15 = vmor %vm1628_vm14, %vm1629_vm13  ;;  %1829 = vmatpush.bf16.msra.mxu2 %v2720_v27  ;;  %v2735_v27 = vld [vmem:[#allocation10 + $0x54] sm:$0xf0] }
 0x99a   : > { %v1624_v31 = vmul.f32 %v2892_v37, %v1623_v38 }
 0x99b   : > { %1304 = vmatmul.bf16.vlgmr.msrb.gmra.mxu1 %v1194_v39  ;;  %1317 = vmatmul.bf16.vlgmr.msrb.gmra.mxu2 %v1194_v39 }
 0x99c   : > { %v1625_v41 = vmul.f32 0.5, %v1624_v31 }
 0x99d   : > { %1830 = vmatpush.bf16.msra.mxu2 %v2719_v40  ;;  %v2734_v40 = vld [vmem:[#allocation10 + $0x54] sm:$0xf] }
 0x99e   : > { %v1626_v42 = vsub.f32 1.5, %v1625_v41 }
 0x9a0   : > { %v1627_v9 = vmul.f32 %v2892_v37, %v1626_v42 }
 0x9a1   : > { %1831 = vmatpush.bf16.msra.mxu2 %v2718_v28  ;;  %v2601_v28 = vor.u32 %v2735_v27, %v2600_v26 }
 0x9a2   : > { %v1631_v12 = vsel %vm1630_vm15, %v2892_v37, %v1627_v9 }
 0x9a3   : > { %v1632_v44 = vmul.f32 %v1631_v12, %v3456_v16  ;;  %v1213_v16 = vperm.slane %v3481_v52, 1 }
 0x9a5   : > { %v1633_v11 = vmul.f32 %v1632_v44, %v932_v20  ;;  %1832 = vmatpush.bf16.msra.mxu2 %v2717_v30  ;;  %v2602_v30 = vld [vmem:[#allocation10 + $0x58] sm:$0xf0] }
 0x9a7   : > { %v1634_v48 = vadd.f32 %v1633_v11, %v934_v51 }
 0x9a9   : > { %v1636_v50 = vpack.c.bf16 %v1634_v48, %v1634_v48  ;;  %v3490_v61 = vadd.f32 %v1634_v48, %v3441_v47  ;;  %1833 = vmatpush.bf16.msra.mxu2 %v2716_v29  ;;  %v2592_v29 = vld [vmem:[#allocation10 + $0x40] sm:$0xf] }
 0x9ab   : > { %1709 = vmatmul.bf16.vlgmr.msra.gmra.mxu1 %v1636_v50 }
 0xa18   : > { %v1305_v55 = vpop.f32.mrf.mxu1 }
 0xa19   : > { %v1306_v56 = vadd.f32 %v1305_v55, %v1212_v54 }
 0xa1b   : > { %1322 = vst [vmem:[#allocation13] sm:$0xff] %v1306_v56 }
 0xa1e   : > { %v1318_v20 = vpop.f32.mrf.mxu2 }
 0xa1f   : > { %v1319_v51 = vadd.f32 %v1318_v20, %v1213_v16 }
 0xa20   : > { %v1307_v57 = vpop.f32.mrf.mxu1 }
 0xa21   : > { %1323 = vst [vmem:[#allocation13 + $0x8] sm:$0xff] %v1319_v51 }
 0xa26   : > { %v1320_v58 = vpop.f32.mrf.mxu2 }
 0xa28   : > { %v1710_v59 = vpop.f32.mrf.mxu1 }
 0xa29   : > { %v1711_v62 = vadd.f32 %v1710_v59, %v955_v33 }
 0xa2b   : > { %v1714_v53 = vadd.f32 %v1711_v62, %v3490_v61 }
 0xa2d   : > { %v2524_v1 = vmul.f32 -1.442695, %v1714_v53 }
 0xa2f   : > { %2893 = vpow2.f32 %v2524_v1 }
 0xa30   : > { %v1712_v2 = vpop.f32.mrf.mxu1 }
 0xa35   : > { %v2894_v4 = vpop.eup %2893 }
 0xa36   : > { %v1718_v5 = vadd.f32 1.0, %v2894_v4 }
 0xa38   : > { %2895 = vrcp.f32 %v1718_v5  ;;  %v1730_v8 = vand.u32 2147483648, %v1718_v5  ;;  %v1728_v14 = vand.u32 2147483647, %v1718_v5  ;;  %vm1724_vm1 = vweird.f32 %v1718_v5 }
 0xa3a   : > { %v1731_v17 = vor.u32 1.1754944e-38, %v1730_v8  ;;  %vm1729_vm3 = vcmp.eq.f32.partialorder %v1728_v14, 8.507059e+37  ;;  %v2616_v14 = vld [vmem:[#allocation10 + $0x70] sm:$0xf] }
 0xa3e   : > { %v2896_v6 = vpop.eup %2895 }
 0xa3f   : > { %v1720_v7 = vmul.f32 %v2896_v6, %v1718_v5  ;;  %vm1725_vm0 = vweird.f32 %v2896_v6 }
 0xa40   : > { %vm1726_vm2 = vmor %vm1724_vm1, %vm1725_vm0 }
 0xa41   : > { %v1721_v63 = vsub.f32 1.0, %v1720_v7 }
 0xa43   : > { %v1722_v13 = vmul.f32 %v2896_v6, %v1721_v63 }
 0xa45   : > { %v1723_v47 = vadd.f32 %v2896_v6, %v1722_v13 }
 0xa47   : > { %v1727_v33 = vsel %vm1726_vm2, %v2896_v6, %v1723_v47  ;;  %v2739_v47 = vld [vmem:[#allocation10 + $0x74] sm:$0xf0] }
 0xa48   : > { %v1732_v18 = vsel %vm1729_vm3, %v1731_v17, %v1727_v33  ;;  %v2738_v17 = vld [vmem:[#allocation10 + $0x74] sm:$0xf]  ;;  %v2617_v33 = vor.u32 %v2739_v47, %v2616_v14 }
 0xa49   : > { %v1734_v21 = vmul.f32 %v1732_v18, %v1714_v53  ;;  %v2618_v18 = vld [vmem:[#allocation10 + $0x78] sm:$0xf0] }
 0xa4a   : > { %1982 = vmatpush.bf16.msra.mxu3 %v2617_v33 }
 0xa4b   : > { %1735 = vadd.xlane.f32.xlu0 %v1734_v21 }
 0xabe   : > { %v1736_v22 = vpop.xlane.xlu0 %1735 }
 0xabf   : > { %v1737_v24 = vmul.f32 0.03125, %v1736_v22  ;;  %v2608_v22 = vld [vmem:[#allocation10 + $0x60] sm:$0xf] }
 0xac1   : > { %v1738_v25 = vsub.f32 %v1734_v21, %v1737_v24  ;;  %v1742_v35 = vmul.f32 96.0, %v1737_v24  ;;  %v2621_v21 = vor.u32 %v2738_v17, %v2618_v18 }
 0xac3   : > { %v1739_v10 = vmul.f32 %v1738_v25, %v1738_v25  ;;  %v1743_v15 = vmul.f32 %v1742_v35, %v1737_v24  ;;  %1995 = vmatpush.bf16.msrb.mxu0 %v2621_v21  ;;  %v2737_v24 = vld [vmem:[#allocation10 + $0x64] sm:$0xf0]  ;;  %v2605_v35 = vor.u32 %v2734_v40, %v2602_v30 }
 0xac5   : > { %1740 = vadd.xlane.f32.xlu1 %v1739_v10  ;;  %v2609_v10 = vor.u32 %v2737_v24, %v2608_v22 }
 0xac7   : > { %1983 = vmatpush.bf16.msra.mxu3 %v2609_v10 }
 0xacb   : > { %1984 = vmatpush.bf16.msra.mxu3 %v2601_v28 }
 0xb38   : > { %v1741_v46 = vpop.xlane.xlu1 %1740 }
 0xb39   : > { %v1744_v37 = vsub.f32 %v1741_v46, %v1743_v15  ;;  %v2733_v15 = vld [vmem:[#allocation10 + $0x44] sm:$0xf0]  ;;  %v2732_v46 = vld [vmem:[#allocation10 + $0x44] sm:$0xf] }
 0xb3b   : > { %v1745_v49 = vmul.f32 0.03125, %v1744_v37  ;;  %v2593_v37 = vor.u32 %v2733_v15, %v2592_v29 }
 0xb3d   : > { %v1746_v38 = vadd.f32 0.1, %v1745_v49  ;;  %v2594_v49 = vld [vmem:[#allocation10 + $0x48] sm:$0xf0]  ;;  %1985 = vmatpush.bf16.msra.mxu3 %v2593_v37 }
 0xb3f   : > { %2897 = vrsqrt.f32 %v1746_v38  ;;  %vm1753_vm5 = vweird.f32 %v1746_v38 }
 0xb45   : > { %v2898_v39 = vpop.eup %2897 }
 0xb46   : > { %v1748_v31 = vmul.f32 %v2898_v39, %v1746_v38  ;;  %vm1754_vm4 = vweird.f32 %v2898_v39  ;;  %v2597_v38 = vor.u32 %v2732_v46, %v2594_v49 }
 0xb47   : > { %vm1755_vm6 = vmor %vm1753_vm5, %vm1754_vm4 }
 0xb48   : > { %v1749_v41 = vmul.f32 %v2898_v39, %v1748_v31  ;;  %v2731_v31 = vld [vmem:[#allocation10 + $0x34] sm:$0xf0] }
 0xb4a   : > { %v1750_v42 = vmul.f32 0.5, %v1749_v41  ;;  %v2730_v41 = vld [vmem:[#allocation10 + $0x34] sm:$0xf] }
 0xb4c   : > { %v1751_v9 = vsub.f32 1.5, %v1750_v42 }
 0xb4e   : > { %v1752_v12 = vmul.f32 %v2898_v39, %v1751_v9  ;;  %v2586_v9 = vld [vmem:[#allocation10 + $0x38] sm:$0xf0] }
 0xb50   : > { %v1756_v44 = vsel %vm1755_vm6, %v2898_v39, %v1752_v12  ;;  %v2584_v39 = vld [vmem:[#allocation10 + $0x30] sm:$0xf]  ;;  %v2589_v12 = vor.u32 %v2730_v41, %v2586_v9 }
 0xb51   : > { %v1757_v11 = vmul.f32 %v1756_v44, %v1738_v25  ;;  %v2736_v25 = vld [vmem:[#allocation10 + $0x64] sm:$0xf]  ;;  %v2585_v42 = vor.u32 %v2731_v31, %v2584_v39  ;;  %v2576_v44 = vld [vmem:[#allocation10 + $0x20] sm:$0xf] }
 0xb52   : > { %v2613_v23 = vor.u32 %v2736_v25, %v2610_v43 }
 0xb53   : > { %v1758_v48 = vmul.f32 %v1757_v11, %v1061_v0  ;;  %1986 = vmatpush.bf16.msra.mxu3 %v2585_v42  ;;  %v2729_v11 = vld [vmem:[#allocation10 + $0x24] sm:$0xf0] }
 0xb54   : > { %1996 = vmatpush.bf16.msrb.mxu0 %v2613_v23 }
 0xb55   : > { %v1759_v50 = vadd.f32 %v1758_v48, %v1063_v3  ;;  %v2728_v48 = vld [vmem:[#allocation10 + $0x24] sm:$0xf] }
 0xb57   : > { %v1761_v55 = vpack.c.bf16 %v1759_v50, %v1759_v50  ;;  %v1760_v20 = vadd.f32 %v1759_v50, %v3490_v61  ;;  %v2577_v50 = vor.u32 %v2729_v11, %v2576_v44 }
 0xb58   : > { %1997 = vmatpush.bf16.msrb.mxu0 %v2605_v35 }
 0xb59   : > { %1834 = vmatmul.bf16.vlgmr.msra.gmra.mxu2 %v1761_v55  ;;  %v2578_v55 = vld [vmem:[#allocation10 + $0x28] sm:$0xf0]  ;;  %1987 = vmatpush.bf16.msra.mxu3 %v2577_v50 }
 0xb5c   : > { %1998 = vmatpush.bf16.msrb.mxu0 %v2597_v38 }
 0xb60   : > { %1999 = vmatpush.bf16.msrb.mxu0 %v2589_v12 }
 0xbdc   : > { %v1835_v56 = vpop.f32.mrf.mxu2 }
 0xbdd   : > { %v1836_v51 = vadd.f32 %v1835_v56, %v1084_v19  ;;  %v2581_v56 = vor.u32 %v2728_v48, %v2578_v55 }
 0xbdf   : > { %v1839_v57 = vadd.f32 %v1836_v51, %v1760_v20  ;;  %2000 = vmatpush.bf16.msrb.mxu0 %v2581_v56  ;;  %v2568_v20 = vld [vmem:[#allocation10 + $0x10] sm:$0xf]  ;;  %v2727_v51 = vld [vmem:[#allocation10 + $0x14] sm:$0xf0] }
 0xbe1   : > { %v2557_v58 = vmul.f32 -1.442695, %v1839_v57 }
 0xbe3   : > { %2899 = vpow2.f32 %v2557_v58  ;;  %v2569_v58 = vor.u32 %v2727_v51, %v2568_v20 }
 0xbe4   : > { %v1837_v59 = vpop.f32.mrf.mxu2 }
 0xbe5   : > { %v2570_v59 = vld [vmem:[#allocation10 + $0x18] sm:$0xf0]  ;;  %1988 = vmatpush.bf16.msra.mxu3 %v2569_v58 }
 0xbe9   : > { %v2900_v62 = vpop.eup %2899 }
 0xbea   : > { %v1843_v53 = vadd.f32 1.0, %v2900_v62  ;;  %v2560_v62 = vld [vmem:[#allocation10] sm:$0xf] }
 0xbec   : > { %2901 = vrcp.f32 %v1843_v53  ;;  %v1855_v45 = vand.u32 2147483648, %v1843_v53  ;;  %v1853_v4 = vand.u32 2147483647, %v1843_v53  ;;  %vm1849_vm8 = vweird.f32 %v1843_v53 }
 0xbee   : > { %v1856_v61 = vor.u32 1.1754944e-38, %v1855_v45  ;;  %vm1854_vm10 = vcmp.eq.f32.partialorder %v1853_v4, 8.507059e+37 }
 0xbf2   : > { %v2902_v1 = vpop.eup %2901 }
 0xbf3   : > { %v1845_v0 = vmul.f32 %v2902_v1, %v1843_v53  ;;  %vm1850_vm7 = vweird.f32 %v2902_v1  ;;  %v2725_v53 = vld [vmem:[#allocation10 + $0x4] sm:$0xf0] }
 0xbf4   : > { %vm1851_vm9 = vmor %vm1849_vm8, %vm1850_vm7 }
 0xbf5   : > { %v1846_v2 = vsub.f32 1.0, %v1845_v0  ;;  %v2724_v0 = vld [vmem:[#allocation10 + $0x4] sm:$0xf] }
 0xbf7   : > { %v1847_v3 = vmul.f32 %v2902_v1, %v1846_v2  ;;  %v2562_v2 = vld [vmem:[#allocation10 + $0x8] sm:$0xf0] }
 0xbf8   : > { %v2565_v4 = vor.u32 %v2724_v0, %v2562_v2 }
 0xbf9   : > { %v1848_v5 = vadd.f32 %v2902_v1, %v1847_v3  ;;  %v2561_v3 = vor.u32 %v2725_v53, %v2560_v62 }
 0xbfb   : > { %v1852_v60 = vsel %vm1851_vm9, %v2902_v1, %v1848_v5  ;;  %1989 = vmatpush.bf16.msra.mxu3 %v2561_v3 }
 0xbfc   : > { %v1857_v19 = vsel %vm1854_vm10, %v1856_v61, %v1852_v60 }
 0xbfd   : > { %v1859_v6 = vmul.f32 %v1857_v19, %v1839_v57  ;;  %v2726_v57 = vld [vmem:[#allocation10 + $0x14] sm:$0xf] }
 0xbfe   : > { %v2573_v1 = vor.u32 %v2726_v57, %v2570_v59 }
 0xbff   : > { %1860 = vadd.xlane.f32.xlu2 %v1859_v6 }
 0xc00   : > { %2001 = vmatpush.bf16.msrb.mxu0 %v2573_v1 }
 0xc04   : > { %2002 = vmatpush.bf16.msrb.mxu0 %v2565_v4 }
 0xc72   : > { %v1861_v7 = vpop.xlane.xlu2 %1860 }
 0xc73   : > { %v3502_v63 = vmul.f32 0.03125, %v1861_v7 }
 0xc75   : > { %v3505_v8 = vsub.f32 %v1859_v6, %v3502_v63  ;;  %v1867_v45 = vmul.f32 96.0, %v3502_v63 }
 0xc77   : > { %v1864_v13 = vmul.f32 %v3505_v8, %v3505_v8  ;;  %v1868_v5 = vmul.f32 %v1867_v45, %v3502_v63 }
 0xc79   : > { %1865 = vadd.xlane.f32.xlu0 %v1864_v13 }
 0xcec   : > { %v1866_v61 = vpop.xlane.xlu0 %1865 }
 0xced   : > { %v1869_v60 = vsub.f32 %v1866_v61, %v1868_v5 }
 0xcef   : > { %v1870_v19 = vmul.f32 0.03125, %v1869_v60 }
 0xcf1   : > { %v1871_v6 = vadd.f32 0.1, %v1870_v19 }
 0xcf3   : > { %2903 = vrsqrt.f32 %v1871_v6  ;;  %vm1878_vm12 = vweird.f32 %v1871_v6 }
 0xcf9   : > { %v2904_v7 = vpop.eup %2903 }
 0xcfa   : > { %v1873_v13 = vmul.f32 %v2904_v7, %v1871_v6  ;;  %vm1879_vm11 = vweird.f32 %v2904_v7 }
 0xcfb   : > { %vm1880_vm13 = vmor %vm1878_vm12, %vm1879_vm11 }
 0xcfc   : > { %v1874_v14 = vmul.f32 %v2904_v7, %v1873_v13 }
 0xcfe   : > { %v1875_v47 = vmul.f32 0.5, %v1874_v14 }
 0xd00   : > { %v1876_v17 = vsub.f32 1.5, %v1875_v47 }
 0xd02   : > { %v1877_v33 = vmul.f32 %v2904_v7, %v1876_v17 }
 0xd04   : > { %v1881_v18 = vsel %vm1880_vm13, %v2904_v7, %v1877_v33 }
 0xd05   : > { %v1882_v21 = vmul.f32 %v1881_v18, %v3505_v8 }
 0xd07   : > { %v1883_v63 = vmul.f32 %v1882_v21, %v1190_v34 }
 0xd09   : > { %v1884_v22 = vadd.f32 %v1883_v63, %v1192_v36 }
 0xd0b   : > { %v1885_v24 = vpack.c.bf16 %v1884_v22, %v1884_v22 }
 0xd0d   : > { %1990 = vmatmul.bf16.vlgmr.msra.gmra.mxu3 %v1885_v24  ;;  %2003 = vmatmul.bf16.vlgmr.msrb.gmra.mxu0 %v1885_v24 }
 0xd8a   : > { %v2004_v25 = vpop.f32.mrf.mxu0 }
 0xd8b   : > { %v2005_v10 = vadd.f32 %v2004_v25, %v1213_v16 }
 0xd8d   : > { %2009 = vst [vmem:[#allocation13 + $0x18] sm:$0xff] %v2005_v10 }
 0xd90   : > { %v1991_v43 = vpop.f32.mrf.mxu3 }
 0xd91   : > { %v1992_v23 = vadd.f32 %v1991_v43, %v1212_v54 }
 0xd92   : > { %v2006_v26 = vpop.f32.mrf.mxu0 }
 0xd93   : > { %2008 = vst [vmem:[#allocation13 + $0x10] sm:$0xff] %v1992_v23 }
 0xd98   : > { %v1993_v8 = vpop.f32.mrf.mxu3 }
 0xd99 PF: > { %p2775_p3 = scmp.eq.s32.totalorder %s3224_s27, 2  ;;  %s3559_s20 = sld [smem:[#allocation22_spill]] }
 0xd9a   : > { %s3157_s21 = smov [#allocation13]   ;;  %s3158_s16 = smov 256  }
 0xd9b   : > { %s2019_s9 = sshll.u32 %s3157_s21, 4  ;;  %s3159_s19 = smov 16   ;;  %s2020_s9 = int_to_ptr.vmem [resolvable:$true] %s2019_s9 }
 0xd9f   : > { %s2021_s3 = sshll.u32 %s3559_s20, 4  ;;  %s2022_s3 = int_to_ptr.hbm [resolvable:$true] %s2021_s3 }
 0xda0   : > { %2756 = dma.vmem_to_hbm [thread:$0]  (%p2775_p3), %s2020_s9, 512, %s2022_s3, [#allocation6], %s3158_s16, %s3158_s16, %s3159_s19  }
 0xda1   : > { %3117 = dma.done.wait (%p2775_p3), [#allocation6], 512  }
 0xda2   : > { %3119 = vsyncadd (%p2775_p3), [#allocation6], 4294966784 }
 0xda3 PF: > { %s24_s26 = sadd.s32 1, %s3142_s26   ;;  %s3560_s27 = sld [smem:[#allocation20_spill]] }
 0xda4   : > { %p21_p4 = scmp.ge.s32.totalorder %s24_s26, 5   ;;  %s3561_s28 = sld [smem:[#allocation19_spill]] }
 0xda5   : > { %s3562_s21 = smov %s3126_s22  ;;  %s3563_s22 = smov %s3130_s23 }
 0xda6   : > { %s3565_s24 = smov %s3138_s25  ;;  %23 = sbr.rel (!%p21_p4) target bundleno = 11 (0xb), region = 122 }
 0xda9   : > { %s3564_s23 = smov %s3560_s27 }
 0xdaa   : > { %s3566_s25 = smov %s3561_s28 }
 0xdab   :  { %2038 = vsyncpa [#allocation5], 1 }
 0xdac   :  { %2040 = vsyncpa [#allocation5 + $0x1], 1 }
 0xdad   :  { %2041 = vsyncpa [#allocation8], 1 }
 0xdae   :  { %2043 = vsyncpa [#allocation8 + $0x1], 1 }
 0xdaf   :  { %2044 = vsyncpa [#allocation11], 1 }
 0xdb0   :  { %2045 = vsyncpa [#allocation6], 1 }
 0xdb1   :  { %2047 = vsyncpa [#allocation6 + $0x1], 1 }

</bundles_post_ra>
